<compile_context>
chip_gen: v7x
topology: tpu7x:2x2x1
jax: 0.10.0
libtpu: 0.0.40
codegen_flags: <defaults>
</compile_context>

<pallas_src>
import functools
import math

import jax
import jax.numpy as jnp
import numpy as np
from jax.experimental import pallas as pl
from jax.experimental.pallas import tpu as pltpu


_VMEM_STEP_BUDGET = 20 * 1024 * 1024     # per-grid-step working-set target (bytes)
_VMEM_LIMIT_BYTES = 48 * 1024 * 1024     # > 32 MiB default scoped, < v7x 64 MiB physical


def _round_up(x, m):
    return ((x + m - 1) // m) * m


# --------------------------------- in-kernel helpers ---------------------------------

def _elu(y):
    # ELU(alpha=1): negative branch expm1(y) via a single EUP exp; the min() keeps the
    # unselected branch finite for large positive y.
    return jnp.where(y > 0.0, y, jnp.exp(jnp.minimum(y, 0.0)) - 1.0)


def _conv3x3_s2(x, w_band, bias, out_dtype):
    """3x3 / stride-2 / pad-1 conv + bias + ELU on a lane-dense activation tile.

    x:      (A, NB, B*Cin) bf16      rows on the leading dim, batch on sublanes,
                                     (column, channel) on lanes.
    w_band: (3, B*Cin, Bo*Cout) bf16 banded weight per row-tap ka:
                                     w_band[ka, b*Cin+ci, bo*Cout+co] = K[co,ci,kb,ka]
                                     iff b == 2*bo-1+kb (zero-padding columns dropped).
    bias:   (1, Bo*Cout) f32 (pre-tiled over bo).
    returns (Ao, NB, Bo*Cout) out_dtype.
    """
    A, NB, L = x.shape
    N = w_band.shape[-1]
    Ao = A // 2

    # Row phase split along the leading dim (free): tap ka reads input row 2*ao-1+ka.
    xr = x.reshape(Ao, 2, NB, L)
    a_even, a_odd = xr[:, 0], xr[:, 1]                       # rows 2*ao, 2*ao+1
    if Ao == 1:
        a_prev = jnp.zeros((1, NB, L), x.dtype)              # row -1 is zero padding
    else:
        a_prev = jnp.concatenate(                            # rows 2*ao-1 (zero halo)
            [jnp.zeros((1, NB, L), x.dtype), a_odd[:-1]], axis=0)

    # Three accumulated MXU matmuls, one per row tap (kept in acc+=dot form so the
    # v7x MRB can accumulate in place; v5e/v6e pay the two f32 adds).
    acc = jnp.dot(a_prev.reshape(Ao * NB, L), w_band[0],
                  preferred_element_type=jnp.float32)
    acc = acc + jnp.dot(a_even.reshape(Ao * NB, L), w_band[1],
                        preferred_element_type=jnp.float32)
    acc = acc + jnp.dot(a_odd.reshape(Ao * NB, L), w_band[2],
                        preferred_element_type=jnp.float32)
    y = _elu(acc + bias)
    return y.astype(out_dtype).reshape(Ao, NB, N)


def _fused_kernel(x_ref, w1_ref, w2_ref, w3_ref, w4_ref, b_ref, o_ref, *, widths):
    n1, n2, n3, n4 = widths
    b = b_ref[...]                                           # (4, max_width) f32
    # uint8 -> bf16; the 1/255 scale is folded into w1.  The int32/f32 hops keep the
    # cast on a known-good Mosaic lowering path (no full-tile multiply anymore).
    x = x_ref[...].astype(jnp.int32).astype(jnp.float32).astype(jnp.bfloat16)
    x = _conv3x3_s2(x, w1_ref[...], b[0:1, :n1], jnp.bfloat16)
    x = _conv3x3_s2(x, w2_ref[...], b[1:2, :n2], jnp.bfloat16)
    x = _conv3x3_s2(x, w3_ref[...], b[2:3, :n3], jnp.bfloat16)
    x = _conv3x3_s2(x, w4_ref[...], b[3:4, :n4], jnp.float32)
    o_ref[...] = x                                           # (W//16, NB, (H//16)*32)


# ----------------------------------- forward wrapper -----------------------------------

def _step_vmem_bytes(nb, W, H, C):
    """Rough per-grid-step VMEM footprint (bytes), used to auto-size the batch tile."""
    total = 2 * (W * nb * H * C)              # double-buffered uint8 input block
    total += 2 * W * nb * H * C               # bf16 cast of the input
    a, b, cin = W, H, C
    for _ in range(4):
        ao, bo = a // 2, b // 2
        total += 2 * a * nb * b * cin               # shifted-row copy (bf16)
        total += 4 * ao * nb * bo * 32              # f32 accumulator
        total += 2 * ao * nb * bo * 32              # layer output (bf16)
        total += 2 * (2 * 3 * b * cin * bo * 32)    # banded weights (x2 buffers)
        a, b, cin = ao, bo, 32
    return total


def forward(frame, params, *, nb_tile=256):
    """frame: (T, B, C, W, H) uint8 -> state embedding (T, B, 32*(W//16)*(H//16)) f32."""
    T, B, C, W, H = frame.shape
    w1, w2, w3, w4, bmat = params
    assert W % 16 == 0 and H % 16 == 0, (
        "fused kernel needs even spatial dims at every layer (W, H % 16 == 0)")
    # TODO(synk): odd spatial sizes (e.g. 42x42 Mario/Doom frames) would need per-layer
    # halo handling in the phase-split conv; not implemented here.
    Ao4, Bo4 = W // 16, H // 16
    F = 32 * Ao4 * Bo4
    TB = T * B
    widths = tuple(int(w.shape[-1]) for w in (w1, w2, w3, w4))

    # ---- batch-tile (NB) selection --------------------------------------------------
    nb = max(8, min(nb_tile, _round_up(TB, 8)))
    nb = _round_up(nb, 8)
    while nb > 8 and _step_vmem_bytes(nb, W, H, C) > _VMEM_STEP_BUDGET:
        nb = max(8, _round_up(nb // 2, 8))
    # v7x megacore: ensure >= 2 grid steps whenever the batch allows it, so
    # dimension_semantics=("parallel",) can shard tiles across both TensorCores.
    if _round_up(TB, nb) // nb < 2 and TB >= 16:
        nb = _round_up((TB + 1) // 2, 8)
    TBp = _round_up(TB, nb)
    grid = (TBp // nb,)

    # ---- input layout ---------------------------------------------------------------
    # (T,B,C,W,H) -> (TB, W, H*C) is a pure row-major reinterpretation: identical bytes
    # to the reference's reshape(T,B,W,H,C) + flatten(0,1) with the (H, C) dims merged.
    x = frame.reshape(TB, W, H * C)
    # One cheap uint8 transpose so rows (W) are the leading dim, batch is the sublane
    # dim and the (h, c) receptive field is the (lane-dense) contraction axis.
    x = jnp.transpose(x, (1, 0, 2))                          # (W, TB, H*C) uint8
    if TBp != TB:
        x = jnp.pad(x, ((0, 0), (0, TBp - TB), (0, 0)))

    # ---- advisory cost estimate -----------------------------------------------------
    flops = 0
    trans = 0
    a, b_, cin = W, H, C
    for _ in range(4):
        ao, bo = a // 2, b_ // 2
        flops += 2 * 3 * ao * (b_ * cin) * (bo * 32)         # banded matmuls / frame
        trans += ao * bo * 32                                # one exp per output elem
        a, b_, cin = ao, bo, 32
    bytes_accessed = int(TBp * W * H * C
                         + 2 * sum(int(w.size) for w in (w1, w2, w3, w4))
                         + 4 * int(bmat.size)
                         + 4 * TBp * F)
    cost = pl.CostEstimate(flops=flops * TBp, transcendentals=trans * TBp,
                           bytes_accessed=bytes_accessed)

    out = pl.pallas_call(
        functools.partial(_fused_kernel, widths=widths),
        out_shape=jax.ShapeDtypeStruct((Ao4, TBp, Bo4 * 32), jnp.float32),
        grid=grid,
        in_specs=[
            pl.BlockSpec((W, nb, H * C), lambda i: (0, i, 0)),    # uint8 frames
            pl.BlockSpec(w1.shape, lambda i: (0, 0, 0)),          # banded weights
            pl.BlockSpec(w2.shape, lambda i: (0, 0, 0)),
            pl.BlockSpec(w3.shape, lambda i: (0, 0, 0)),
            pl.BlockSpec(w4.shape, lambda i: (0, 0, 0)),
            pl.BlockSpec(bmat.shape, lambda i: (0, 0)),           # tiled biases
        ],
        out_specs=pl.BlockSpec((Ao4, nb, Bo4 * 32), lambda i: (0, i, 0)),
        compiler_params=pltpu.CompilerParams(
            dimension_semantics=("parallel",),
            vmem_limit_bytes=_VMEM_LIMIT_BYTES),
        cost_estimate=cost,
    )(x, w1, w2, w3, w4, bmat)

    # Kernel output: out[ao, n, bo*32 + co] == y_nchw[n, co, bo, ao].  Reproduce the
    # torch channel-major view(T, B, -1) flatten on the (tiny) final activations.
    out = out.reshape(Ao4, TBp, Bo4, 32)
    out = jnp.transpose(out, (1, 3, 2, 0)).reshape(TBp, F)
    return out[:TB].reshape(T, B, F)


# ------------------------------ parameter initialization ------------------------------

def orthogonal(key, rows, cols, gain):
    """Same semantics as torch.nn.init.orthogonal_ on a (rows, cols) matrix."""
    n, m = max(rows, cols), min(rows, cols)
    a = jax.random.normal(key, (n, m), dtype=jnp.float32)
    q, r = jnp.linalg.qr(a)
    q = q * jnp.sign(jnp.diag(r))
    if rows < cols:
        q = q.T
    return gain * q


def init_params(key, in_channels):
    """Torch-layout conv weights K_l: (32, Cin, 3, 3) (orthogonal, gain=sqrt(2)), zero bias."""
    gain = math.sqrt(2.0)  # nn.init.calculate_gain('relu')
    chans = [in_channels, 32, 32, 32]
    Ks, bs = [], []
    for cin in chans:
        key, sub = jax.random.split(key)
        w2d = orthogonal(sub, 32, 9 * cin, gain)          # (32, cin*3*3)
        Ks.append(w2d.reshape(32, cin, 3, 3))
        bs.append(jnp.zeros((32,), jnp.float32))
    return Ks, bs


def pack_params(Ks, bs, spatial_wh):
    """Convert torch-layout conv weights into the kernel's banded bf16 layouts.

    Per layer (input spatial (A=W_l, B=H_l), channels Cin -> Cout=32):
      w_band[ka, b*Cin + ci, bo*Cout + co] = K[co, ci, kb, ka]   with b = 2*bo - 1 + kb
    (entries reading the zero-padding column stay 0).  The 1/255 input scale is folded
    into the layer-1 weights in f32 before the bf16 cast; biases are tiled over bo.
    """
    W, H = spatial_wh
    A, B = W, H
    banded, bias_rows, widths = [], [], []
    for li, (K, bvec) in enumerate(zip(Ks, bs)):
        K = np.asarray(K, np.float32)
        bvec = np.asarray(bvec, np.float32)
        Cout, Cin = K.shape[0], K.shape[1]
        Ao, Bo = A // 2, B // 2
        w = np.transpose(K, (3, 2, 1, 0))                 # w[ka, kb, ci, co]
        if li == 0:
            w = w * (1.0 / 255.0)                         # fold /255 in f32, then bf16
        wb = np.zeros((3, B * Cin, Bo * Cout), np.float32)
        for ka in range(3):
            for bo in range(Bo):
                for kb in range(3):
                    b_in = 2 * bo - 1 + kb
                    if 0 <= b_in < B:
                        wb[ka, b_in * Cin:(b_in + 1) * Cin,
                           bo * Cout:(bo + 1) * Cout] = w[ka, kb]
        banded.append(jnp.asarray(wb, jnp.bfloat16))
        bias_rows.append(np.tile(bvec, Bo))
        widths.append(Bo * Cout)
        A, B = Ao, Bo
    bmat = np.zeros((4, max(widths)), np.float32)
    for li, row in enumerate(bias_rows):
        bmat[li, :row.size] = row
    return (banded[0], banded[1], banded[2], banded[3], jnp.asarray(bmat))


# ------------------------------------ pure-JAX reference ------------------------------------

def reference_forward(frame, Ks, bs):
    T, B, C, W, H = frame.shape
    x = frame.reshape(T * B, W, H, C).astype(jnp.float32) / 255.0
    x = jnp.transpose(x, (0, 3, 2, 1))                    # transpose(1, 3) -> NCHW
    for K, b in zip(Ks, bs):
        x = jax.lax.conv_general_dilated(
            x, K, window_strides=(2, 2), padding=((1, 1), (1, 1)),
            dimension_numbers=("NCHW", "OIHW", "NCHW"),
            precision=jax.lax.Precision.HIGHEST)
        x = x + b.reshape(1, -1, 1, 1)
        x = jnp.where(x > 0, x, jnp.expm1(x))             # ELU(alpha=1)
    return x.reshape(T, B, -1)


# -------------------------------------------- demo --------------------------------------------

if __name__ == "__main__":
    key = jax.random.PRNGKey(0)
    k_frame, k_params = jax.random.split(key)

    # Small shapes consistent with the module: observation_shape = (C, W, H) = (4, 16, 16)
    T, B, C, W, H = 2, 2, 4, 16, 16
    frame = jax.random.randint(k_frame, (T, B, C, W, H), 0, 256, dtype=jnp.int32)
    frame = frame.astype(jnp.uint8)

    Ks, bs = init_params(k_params, in_channels=C)
    params = pack_params(Ks, bs, (W, H))

    fwd = jax.jit(lambda f: forward(f, params))
    state_embedding = fwd(frame)
    jax.block_until_ready(state_embedding)

    # After 4 stride-2 convs: 16 -> 8 -> 4 -> 2 -> 1 spatial, 32 channels.
    assert state_embedding.shape == (T, B, 32), state_embedding.shape
    assert state_embedding.dtype == jnp.float32

    # Validate against the pure-JAX reference (bf16 MXU operands -> loose tolerance).
    ref = jax.jit(lambda f: reference_forward(f, Ks, bs))(frame)
    np.testing.assert_allclose(np.asarray(state_embedding), np.asarray(ref),
                               rtol=1e-1, atol=1e-1)

    print("KERNEL_OK")
</pallas_src>

<mosaic_0001>
module attributes {stable_mosaic.version = 11 : i64} {
  func.func @_fused_kernel(%arg0: i32, %arg1: memref<16x8x64xi8, #tpu.memory_space<vmem>>, %arg2: memref<3x64x256xbf16, #tpu.memory_space<vmem>>, %arg3: memref<3x256x128xbf16, #tpu.memory_space<vmem>>, %arg4: memref<3x128x64xbf16, #tpu.memory_space<vmem>>, %arg5: memref<3x64x32xbf16, #tpu.memory_space<vmem>>, %arg6: memref<4x256xf32, #tpu.memory_space<vmem>>, %arg7: memref<1x8x32xf32, #tpu.memory_space<vmem>>) attributes {dimension_semantics = [#tpu.dimension_semantics<parallel>], iteration_bounds = array<i64: 1>, scalar_prefetch = 0 : i64, scratch_operands = 0 : i64, tpu.core_type = #tpu.core_type<tc>, window_params = [{transform_indices = @transform_0, window_bounds = array<i64: 16, 8, 64>}, {pipeline_mode = #tpu.pipeline_mode<synchronous>, transform_indices = @transform_1, window_bounds = array<i64: 3, 64, 256>}, {pipeline_mode = #tpu.pipeline_mode<synchronous>, transform_indices = @transform_2, window_bounds = array<i64: 3, 256, 128>}, {pipeline_mode = #tpu.pipeline_mode<synchronous>, transform_indices = @transform_3, window_bounds = array<i64: 3, 128, 64>}, {pipeline_mode = #tpu.pipeline_mode<synchronous>, transform_indices = @transform_4, window_bounds = array<i64: 3, 64, 32>}, {pipeline_mode = #tpu.pipeline_mode<synchronous>, transform_indices = @transform_5, window_bounds = array<i64: 4, 256>}, {transform_indices = @transform_6, window_bounds = array<i64: 1, 8, 32>}]} {
    %c0 = arith.constant 0 : index
    %c0_0 = arith.constant 0 : index
    %0 = vector.load %arg6[%c0, %c0_0] : memref<4x256xf32, #tpu.memory_space<vmem>>, vector<4x256xf32>
    %c0_1 = arith.constant 0 : index
    %c0_2 = arith.constant 0 : index
    %c0_3 = arith.constant 0 : index
    %1 = vector.load %arg1[%c0_1, %c0_2, %c0_3] : memref<16x8x64xi8, #tpu.memory_space<vmem>>, vector<16x8x64xi8>
    %2 = arith.extui %1 : vector<16x8x64xi8> to vector<16x8x64xi32>
    %3 = arith.sitofp %2 : vector<16x8x64xi32> to vector<16x8x64xf32>
    %4 = arith.truncf %3 : vector<16x8x64xf32> to vector<16x8x64xbf16>
    %c0_4 = arith.constant 0 : index
    %c0_5 = arith.constant 0 : index
    %c0_6 = arith.constant 0 : index
    %5 = vector.load %arg2[%c0_4, %c0_5, %c0_6] : memref<3x64x256xbf16, #tpu.memory_space<vmem>>, vector<3x64x256xbf16>
    %6 = vector.extract_strided_slice %0 {offsets = [0, 0], sizes = [1, 256], strides = [1, 1]} : vector<4x256xf32> to vector<1x256xf32>
    %7 = vector.shape_cast %4 : vector<16x8x64xbf16> to vector<8x2x8x64xbf16>
    %8 = vector.extract_strided_slice %7 {offsets = [0, 0, 0, 0], sizes = [8, 1, 8, 64], strides = [1, 1, 1, 1]} : vector<8x2x8x64xbf16> to vector<8x1x8x64xbf16>
    %9 = vector.shape_cast %8 : vector<8x1x8x64xbf16> to vector<8x8x64xbf16>
    %10 = vector.extract_strided_slice %7 {offsets = [0, 1, 0, 0], sizes = [8, 1, 8, 64], strides = [1, 1, 1, 1]} : vector<8x2x8x64xbf16> to vector<8x1x8x64xbf16>
    %11 = vector.shape_cast %10 : vector<8x1x8x64xbf16> to vector<8x8x64xbf16>
    %cst = arith.constant 0.000000e+00 : bf16
    %12 = vector.broadcast %cst : bf16 to vector<1x8x64xbf16>
    %13 = vector.extract_strided_slice %11 {offsets = [0, 0, 0], sizes = [7, 8, 64], strides = [1, 1, 1]} : vector<8x8x64xbf16> to vector<7x8x64xbf16>
    %14 = tpu.concatenate %12, %13 in 0 : vector<1x8x64xbf16>, vector<7x8x64xbf16> -> vector<8x8x64xbf16>
    %15 = vector.shape_cast %14 : vector<8x8x64xbf16> to vector<64x64xbf16>
    %16 = vector.extract_strided_slice %5 {offsets = [0, 0, 0], sizes = [1, 64, 256], strides = [1, 1, 1]} : vector<3x64x256xbf16> to vector<1x64x256xbf16>
    %17 = vector.shape_cast %16 : vector<1x64x256xbf16> to vector<64x256xbf16>
    %cst_7 = arith.constant dense<0.000000e+00> : vector<64x256xf32>
    %18 = tpu.matmul %15, %17, %cst_7 {dimension_numbers = #tpu.dot_dimension_numbers<[1], [0], [0], [1], [0, 0, 1, 1], [], []>} : vector<64x64xbf16>, vector<64x256xbf16>, vector<64x256xf32> -> vector<64x256xf32>
    %19 = vector.shape_cast %9 : vector<8x8x64xbf16> to vector<64x64xbf16>
    %20 = vector.extract_strided_slice %5 {offsets = [1, 0, 0], sizes = [1, 64, 256], strides = [1, 1, 1]} : vector<3x64x256xbf16> to vector<1x64x256xbf16>
    %21 = vector.shape_cast %20 : vector<1x64x256xbf16> to vector<64x256xbf16>
    %cst_8 = arith.constant dense<0.000000e+00> : vector<64x256xf32>
    %22 = tpu.matmul %19, %21, %cst_8 {dimension_numbers = #tpu.dot_dimension_numbers<[1], [0], [0], [1], [0, 0, 1, 1], [], []>} : vector<64x64xbf16>, vector<64x256xbf16>, vector<64x256xf32> -> vector<64x256xf32>
    %23 = arith.addf %18, %22 : vector<64x256xf32>
    %24 = vector.shape_cast %11 : vector<8x8x64xbf16> to vector<64x64xbf16>
    %25 = vector.extract_strided_slice %5 {offsets = [2, 0, 0], sizes = [1, 64, 256], strides = [1, 1, 1]} : vector<3x64x256xbf16> to vector<1x64x256xbf16>
    %26 = vector.shape_cast %25 : vector<1x64x256xbf16> to vector<64x256xbf16>
    %cst_9 = arith.constant dense<0.000000e+00> : vector<64x256xf32>
    %27 = tpu.matmul %24, %26, %cst_9 {dimension_numbers = #tpu.dot_dimension_numbers<[1], [0], [0], [1], [0, 0, 1, 1], [], []>} : vector<64x64xbf16>, vector<64x256xbf16>, vector<64x256xf32> -> vector<64x256xf32>
    %28 = arith.addf %23, %27 : vector<64x256xf32>
    %29 = vector.broadcast %6 : vector<1x256xf32> to vector<64x256xf32>
    %30 = arith.addf %28, %29 : vector<64x256xf32>
    %cst_10 = arith.constant 0.000000e+00 : f32
    %31 = vector.broadcast %cst_10 : f32 to vector<64x256xf32>
    %32 = arith.cmpf ogt, %30, %31 : vector<64x256xf32>
    %cst_11 = arith.constant 0.000000e+00 : f32
    %33 = vector.broadcast %cst_11 : f32 to vector<64x256xf32>
    %34 = arith.minimumf %30, %33 : vector<64x256xf32>
    %35 = math.exp %34 : vector<64x256xf32>
    %cst_12 = arith.constant 1.000000e+00 : f32
    %36 = vector.broadcast %cst_12 : f32 to vector<64x256xf32>
    %37 = arith.subf %35, %36 : vector<64x256xf32>
    %38 = arith.select %32, %30, %37 : vector<64x256xi1>, vector<64x256xf32>
    %39 = arith.truncf %38 : vector<64x256xf32> to vector<64x256xbf16>
    %40 = vector.shape_cast %39 : vector<64x256xbf16> to vector<8x8x256xbf16>
    %c0_13 = arith.constant 0 : index
    %c0_14 = arith.constant 0 : index
    %c0_15 = arith.constant 0 : index
    %41 = vector.load %arg3[%c0_13, %c0_14, %c0_15] : memref<3x256x128xbf16, #tpu.memory_space<vmem>>, vector<3x256x128xbf16>
    %42 = vector.extract_strided_slice %0 {offsets = [1, 0], sizes = [1, 128], strides = [1, 1]} : vector<4x256xf32> to vector<1x128xf32>
    %43 = vector.shape_cast %40 : vector<8x8x256xbf16> to vector<4x2x8x256xbf16>
    %44 = vector.extract_strided_slice %43 {offsets = [0, 0, 0, 0], sizes = [4, 1, 8, 256], strides = [1, 1, 1, 1]} : vector<4x2x8x256xbf16> to vector<4x1x8x256xbf16>
    %45 = vector.shape_cast %44 : vector<4x1x8x256xbf16> to vector<4x8x256xbf16>
    %46 = vector.extract_strided_slice %43 {offsets = [0, 1, 0, 0], sizes = [4, 1, 8, 256], strides = [1, 1, 1, 1]} : vector<4x2x8x256xbf16> to vector<4x1x8x256xbf16>
    %47 = vector.shape_cast %46 : vector<4x1x8x256xbf16> to vector<4x8x256xbf16>
    %cst_16 = arith.constant 0.000000e+00 : bf16
    %48 = vector.broadcast %cst_16 : bf16 to vector<1x8x256xbf16>
    %49 = vector.extract_strided_slice %47 {offsets = [0, 0, 0], sizes = [3, 8, 256], strides = [1, 1, 1]} : vector<4x8x256xbf16> to vector<3x8x256xbf16>
    %50 = tpu.concatenate %48, %49 in 0 : vector<1x8x256xbf16>, vector<3x8x256xbf16> -> vector<4x8x256xbf16>
    %51 = vector.shape_cast %50 : vector<4x8x256xbf16> to vector<32x256xbf16>
    %52 = vector.extract_strided_slice %41 {offsets = [0, 0, 0], sizes = [1, 256, 128], strides = [1, 1, 1]} : vector<3x256x128xbf16> to vector<1x256x128xbf16>
    %53 = vector.shape_cast %52 : vector<1x256x128xbf16> to vector<256x128xbf16>
    %cst_17 = arith.constant dense<0.000000e+00> : vector<32x128xf32>
    %54 = tpu.matmul %51, %53, %cst_17 {dimension_numbers = #tpu.dot_dimension_numbers<[1], [0], [0], [1], [0, 0, 1, 1], [], []>} : vector<32x256xbf16>, vector<256x128xbf16>, vector<32x128xf32> -> vector<32x128xf32>
    %55 = vector.shape_cast %45 : vector<4x8x256xbf16> to vector<32x256xbf16>
    %56 = vector.extract_strided_slice %41 {offsets = [1, 0, 0], sizes = [1, 256, 128], strides = [1, 1, 1]} : vector<3x256x128xbf16> to vector<1x256x128xbf16>
    %57 = vector.shape_cast %56 : vector<1x256x128xbf16> to vector<256x128xbf16>
    %cst_18 = arith.constant dense<0.000000e+00> : vector<32x128xf32>
    %58 = tpu.matmul %55, %57, %cst_18 {dimension_numbers = #tpu.dot_dimension_numbers<[1], [0], [0], [1], [0, 0, 1, 1], [], []>} : vector<32x256xbf16>, vector<256x128xbf16>, vector<32x128xf32> -> vector<32x128xf32>
    %59 = arith.addf %54, %58 : vector<32x128xf32>
    %60 = vector.shape_cast %47 : vector<4x8x256xbf16> to vector<32x256xbf16>
    %61 = vector.extract_strided_slice %41 {offsets = [2, 0, 0], sizes = [1, 256, 128], strides = [1, 1, 1]} : vector<3x256x128xbf16> to vector<1x256x128xbf16>
    %62 = vector.shape_cast %61 : vector<1x256x128xbf16> to vector<256x128xbf16>
    %cst_19 = arith.constant dense<0.000000e+00> : vector<32x128xf32>
    %63 = tpu.matmul %60, %62, %cst_19 {dimension_numbers = #tpu.dot_dimension_numbers<[1], [0], [0], [1], [0, 0, 1, 1], [], []>} : vector<32x256xbf16>, vector<256x128xbf16>, vector<32x128xf32> -> vector<32x128xf32>
    %64 = arith.addf %59, %63 : vector<32x128xf32>
    %65 = vector.broadcast %42 : vector<1x128xf32> to vector<32x128xf32>
    %66 = arith.addf %64, %65 : vector<32x128xf32>
    %cst_20 = arith.constant 0.000000e+00 : f32
    %67 = vector.broadcast %cst_20 : f32 to vector<32x128xf32>
    %68 = arith.cmpf ogt, %66, %67 : vector<32x128xf32>
    %cst_21 = arith.constant 0.000000e+00 : f32
    %69 = vector.broadcast %cst_21 : f32 to vector<32x128xf32>
    %70 = arith.minimumf %66, %69 : vector<32x128xf32>
    %71 = math.exp %70 : vector<32x128xf32>
    %cst_22 = arith.constant 1.000000e+00 : f32
    %72 = vector.broadcast %cst_22 : f32 to vector<32x128xf32>
    %73 = arith.subf %71, %72 : vector<32x128xf32>
    %74 = arith.select %68, %66, %73 : vector<32x128xi1>, vector<32x128xf32>
    %75 = arith.truncf %74 : vector<32x128xf32> to vector<32x128xbf16>
    %76 = vector.shape_cast %75 : vector<32x128xbf16> to vector<4x8x128xbf16>
    %c0_23 = arith.constant 0 : index
    %c0_24 = arith.constant 0 : index
    %c0_25 = arith.constant 0 : index
    %77 = vector.load %arg4[%c0_23, %c0_24, %c0_25] : memref<3x128x64xbf16, #tpu.memory_space<vmem>>, vector<3x128x64xbf16>
    %78 = vector.extract_strided_slice %0 {offsets = [2, 0], sizes = [1, 64], strides = [1, 1]} : vector<4x256xf32> to vector<1x64xf32>
    %79 = vector.shape_cast %76 : vector<4x8x128xbf16> to vector<2x2x8x128xbf16>
    %80 = vector.extract_strided_slice %79 {offsets = [0, 0, 0, 0], sizes = [2, 1, 8, 128], strides = [1, 1, 1, 1]} : vector<2x2x8x128xbf16> to vector<2x1x8x128xbf16>
    %81 = vector.shape_cast %80 : vector<2x1x8x128xbf16> to vector<2x8x128xbf16>
    %82 = vector.extract_strided_slice %79 {offsets = [0, 1, 0, 0], sizes = [2, 1, 8, 128], strides = [1, 1, 1, 1]} : vector<2x2x8x128xbf16> to vector<2x1x8x128xbf16>
    %83 = vector.shape_cast %82 : vector<2x1x8x128xbf16> to vector<2x8x128xbf16>
    %cst_26 = arith.constant 0.000000e+00 : bf16
    %84 = vector.broadcast %cst_26 : bf16 to vector<1x8x128xbf16>
    %85 = vector.extract_strided_slice %83 {offsets = [0, 0, 0], sizes = [1, 8, 128], strides = [1, 1, 1]} : vector<2x8x128xbf16> to vector<1x8x128xbf16>
    %86 = tpu.concatenate %84, %85 in 0 : vector<1x8x128xbf16>, vector<1x8x128xbf16> -> vector<2x8x128xbf16>
    %87 = vector.shape_cast %86 : vector<2x8x128xbf16> to vector<16x128xbf16>
    %88 = vector.extract_strided_slice %77 {offsets = [0, 0, 0], sizes = [1, 128, 64], strides = [1, 1, 1]} : vector<3x128x64xbf16> to vector<1x128x64xbf16>
    %89 = vector.shape_cast %88 : vector<1x128x64xbf16> to vector<128x64xbf16>
    %cst_27 = arith.constant dense<0.000000e+00> : vector<16x64xf32>
    %90 = tpu.matmul %87, %89, %cst_27 {dimension_numbers = #tpu.dot_dimension_numbers<[1], [0], [0], [1], [0, 0, 1, 1], [], []>} : vector<16x128xbf16>, vector<128x64xbf16>, vector<16x64xf32> -> vector<16x64xf32>
    %91 = vector.shape_cast %81 : vector<2x8x128xbf16> to vector<16x128xbf16>
    %92 = vector.extract_strided_slice %77 {offsets = [1, 0, 0], sizes = [1, 128, 64], strides = [1, 1, 1]} : vector<3x128x64xbf16> to vector<1x128x64xbf16>
    %93 = vector.shape_cast %92 : vector<1x128x64xbf16> to vector<128x64xbf16>
    %cst_28 = arith.constant dense<0.000000e+00> : vector<16x64xf32>
    %94 = tpu.matmul %91, %93, %cst_28 {dimension_numbers = #tpu.dot_dimension_numbers<[1], [0], [0], [1], [0, 0, 1, 1], [], []>} : vector<16x128xbf16>, vector<128x64xbf16>, vector<16x64xf32> -> vector<16x64xf32>
    %95 = arith.addf %90, %94 : vector<16x64xf32>
    %96 = vector.shape_cast %83 : vector<2x8x128xbf16> to vector<16x128xbf16>
    %97 = vector.extract_strided_slice %77 {offsets = [2, 0, 0], sizes = [1, 128, 64], strides = [1, 1, 1]} : vector<3x128x64xbf16> to vector<1x128x64xbf16>
    %98 = vector.shape_cast %97 : vector<1x128x64xbf16> to vector<128x64xbf16>
    %cst_29 = arith.constant dense<0.000000e+00> : vector<16x64xf32>
    %99 = tpu.matmul %96, %98, %cst_29 {dimension_numbers = #tpu.dot_dimension_numbers<[1], [0], [0], [1], [0, 0, 1, 1], [], []>} : vector<16x128xbf16>, vector<128x64xbf16>, vector<16x64xf32> -> vector<16x64xf32>
    %100 = arith.addf %95, %99 : vector<16x64xf32>
    %101 = vector.broadcast %78 : vector<1x64xf32> to vector<16x64xf32>
    %102 = arith.addf %100, %101 : vector<16x64xf32>
    %cst_30 = arith.constant 0.000000e+00 : f32
    %103 = vector.broadcast %cst_30 : f32 to vector<16x64xf32>
    %104 = arith.cmpf ogt, %102, %103 : vector<16x64xf32>
    %cst_31 = arith.constant 0.000000e+00 : f32
    %105 = vector.broadcast %cst_31 : f32 to vector<16x64xf32>
    %106 = arith.minimumf %102, %105 : vector<16x64xf32>
    %107 = math.exp %106 : vector<16x64xf32>
    %cst_32 = arith.constant 1.000000e+00 : f32
    %108 = vector.broadcast %cst_32 : f32 to vector<16x64xf32>
    %109 = arith.subf %107, %108 : vector<16x64xf32>
    %110 = arith.select %104, %102, %109 : vector<16x64xi1>, vector<16x64xf32>
    %111 = arith.truncf %110 : vector<16x64xf32> to vector<16x64xbf16>
    %112 = vector.shape_cast %111 : vector<16x64xbf16> to vector<2x8x64xbf16>
    %c0_33 = arith.constant 0 : index
    %c0_34 = arith.constant 0 : index
    %c0_35 = arith.constant 0 : index
    %113 = vector.load %arg5[%c0_33, %c0_34, %c0_35] : memref<3x64x32xbf16, #tpu.memory_space<vmem>>, vector<3x64x32xbf16>
    %114 = vector.extract_strided_slice %0 {offsets = [3, 0], sizes = [1, 32], strides = [1, 1]} : vector<4x256xf32> to vector<1x32xf32>
    %115 = vector.shape_cast %112 : vector<2x8x64xbf16> to vector<1x2x8x64xbf16>
    %116 = vector.extract_strided_slice %115 {offsets = [0, 0, 0, 0], sizes = [1, 1, 8, 64], strides = [1, 1, 1, 1]} : vector<1x2x8x64xbf16> to vector<1x1x8x64xbf16>
    %117 = vector.shape_cast %116 : vector<1x1x8x64xbf16> to vector<1x8x64xbf16>
    %118 = vector.extract_strided_slice %115 {offsets = [0, 1, 0, 0], sizes = [1, 1, 8, 64], strides = [1, 1, 1, 1]} : vector<1x2x8x64xbf16> to vector<1x1x8x64xbf16>
    %119 = vector.shape_cast %118 : vector<1x1x8x64xbf16> to vector<1x8x64xbf16>
    %cst_36 = arith.constant 0.000000e+00 : bf16
    %120 = vector.broadcast %cst_36 : bf16 to vector<1x8x64xbf16>
    %121 = vector.shape_cast %120 : vector<1x8x64xbf16> to vector<8x64xbf16>
    %122 = vector.extract_strided_slice %113 {offsets = [0, 0, 0], sizes = [1, 64, 32], strides = [1, 1, 1]} : vector<3x64x32xbf16> to vector<1x64x32xbf16>
    %123 = vector.shape_cast %122 : vector<1x64x32xbf16> to vector<64x32xbf16>
    %cst_37 = arith.constant dense<0.000000e+00> : vector<8x32xf32>
    %124 = tpu.matmul %121, %123, %cst_37 {dimension_numbers = #tpu.dot_dimension_numbers<[1], [0], [0], [1], [0, 0, 1, 1], [], []>} : vector<8x64xbf16>, vector<64x32xbf16>, vector<8x32xf32> -> vector<8x32xf32>
    %125 = vector.shape_cast %117 : vector<1x8x64xbf16> to vector<8x64xbf16>
    %126 = vector.extract_strided_slice %113 {offsets = [1, 0, 0], sizes = [1, 64, 32], strides = [1, 1, 1]} : vector<3x64x32xbf16> to vector<1x64x32xbf16>
    %127 = vector.shape_cast %126 : vector<1x64x32xbf16> to vector<64x32xbf16>
    %cst_38 = arith.constant dense<0.000000e+00> : vector<8x32xf32>
    %128 = tpu.matmul %125, %127, %cst_38 {dimension_numbers = #tpu.dot_dimension_numbers<[1], [0], [0], [1], [0, 0, 1, 1], [], []>} : vector<8x64xbf16>, vector<64x32xbf16>, vector<8x32xf32> -> vector<8x32xf32>
    %129 = arith.addf %124, %128 : vector<8x32xf32>
    %130 = vector.shape_cast %119 : vector<1x8x64xbf16> to vector<8x64xbf16>
    %131 = vector.extract_strided_slice %113 {offsets = [2, 0, 0], sizes = [1, 64, 32], strides = [1, 1, 1]} : vector<3x64x32xbf16> to vector<1x64x32xbf16>
    %132 = vector.shape_cast %131 : vector<1x64x32xbf16> to vector<64x32xbf16>
    %cst_39 = arith.constant dense<0.000000e+00> : vector<8x32xf32>
    %133 = tpu.matmul %130, %132, %cst_39 {dimension_numbers = #tpu.dot_dimension_numbers<[1], [0], [0], [1], [0, 0, 1, 1], [], []>} : vector<8x64xbf16>, vector<64x32xbf16>, vector<8x32xf32> -> vector<8x32xf32>
    %134 = arith.addf %129, %133 : vector<8x32xf32>
    %135 = vector.broadcast %114 : vector<1x32xf32> to vector<8x32xf32>
    %136 = arith.addf %134, %135 : vector<8x32xf32>
    %cst_40 = arith.constant 0.000000e+00 : f32
    %137 = vector.broadcast %cst_40 : f32 to vector<8x32xf32>
    %138 = arith.cmpf ogt, %136, %137 : vector<8x32xf32>
    %cst_41 = arith.constant 0.000000e+00 : f32
    %139 = vector.broadcast %cst_41 : f32 to vector<8x32xf32>
    %140 = arith.minimumf %136, %139 : vector<8x32xf32>
    %141 = math.exp %140 : vector<8x32xf32>
    %cst_42 = arith.constant 1.000000e+00 : f32
    %142 = vector.broadcast %cst_42 : f32 to vector<8x32xf32>
    %143 = arith.subf %141, %142 : vector<8x32xf32>
    %144 = arith.select %138, %136, %143 : vector<8x32xi1>, vector<8x32xf32>
    %145 = vector.shape_cast %144 : vector<8x32xf32> to vector<1x8x32xf32>
    %c0_43 = arith.constant 0 : index
    %c0_44 = arith.constant 0 : index
    %c0_45 = arith.constant 0 : index
    %146 = vector.load %arg7[%c0_43, %c0_44, %c0_45] : memref<1x8x32xf32, #tpu.memory_space<vmem>>, vector<1x8x32xf32>
    tpu.vector_store %arg7[%c0_43, %c0_44, %c0_45], %145 {strides = array<i32>} : memref<1x8x32xf32, #tpu.memory_space<vmem>>, vector<1x8x32xf32>,
    return
  }
  func.func @transform_0(%arg0: i32) -> (i32, i32, i32) {
    %c0_i32 = arith.constant 0 : i32
    %c0_i32_0 = arith.constant 0 : i32
    %c0_i32_1 = arith.constant 0 : i32
    return %c0_i32, %arg0, %c0_i32_0 : i32, i32, i32
  }
  func.func @transform_1(%arg0: i32) -> (i32, i32, i32) {
    %c0_i32 = arith.constant 0 : i32
    %c0_i32_0 = arith.constant 0 : i32
    %c0_i32_1 = arith.constant 0 : i32
    %c0_i32_2 = arith.constant 0 : i32
    return %c0_i32, %c0_i32_0, %c0_i32_1 : i32, i32, i32
  }
  func.func @transform_2(%arg0: i32) -> (i32, i32, i32) {
    %c0_i32 = arith.constant 0 : i32
    %c0_i32_0 = arith.constant 0 : i32
    %c0_i32_1 = arith.constant 0 : i32
    %c0_i32_2 = arith.constant 0 : i32
    return %c0_i32, %c0_i32_0, %c0_i32_1 : i32, i32, i32
  }
  func.func @transform_3(%arg0: i32) -> (i32, i32, i32) {
    %c0_i32 = arith.constant 0 : i32
    %c0_i32_0 = arith.constant 0 : i32
    %c0_i32_1 = arith.constant 0 : i32
    %c0_i32_2 = arith.constant 0 : i32
    return %c0_i32, %c0_i32_0, %c0_i32_1 : i32, i32, i32
  }
  func.func @transform_4(%arg0: i32) -> (i32, i32, i32) {
    %c0_i32 = arith.constant 0 : i32
    %c0_i32_0 = arith.constant 0 : i32
    %c0_i32_1 = arith.constant 0 : i32
    %c0_i32_2 = arith.constant 0 : i32
    return %c0_i32, %c0_i32_0, %c0_i32_1 : i32, i32, i32
  }
  func.func @transform_5(%arg0: i32) -> (i32, i32) {
    %c0_i32 = arith.constant 0 : i32
    %c0_i32_0 = arith.constant 0 : i32
    %c0_i32_1 = arith.constant 0 : i32
    return %c0_i32, %c0_i32_0 : i32, i32
  }
  func.func @transform_6(%arg0: i32) -> (i32, i32, i32) {
    %c0_i32 = arith.constant 0 : i32
    %c0_i32_0 = arith.constant 0 : i32
    %c0_i32_1 = arith.constant 0 : i32
    return %c0_i32, %arg0, %c0_i32_0 : i32, i32, i32
  }
}

</mosaic_0001>

<bundles_post_ra>
// kernel: _lambda_.1
= control target key start
LH: loop header
LB: loop body
LE: loop exit
PB: predicated region body
PF: predicated region fallthrough
CT: control target
= control target key end

     0   :  { %11 = vsyncpa [#allocation3], 0  ;;  %s2521_s21 = smov [#allocation2]   ;;  %s3162_s0 = inlined_call_operand.vmem [shape: u8[16,8,64], index: 0, kind: input, shape index: {}]   ;;  %s3163_s1 = inlined_call_operand.vmem [shape: bf16[3,64,256], index: 1, kind: input, shape index: {}]   ;;  %s3164_s2 = inlined_call_operand.vmem [shape: bf16[3,256,128], index: 2, kind: input, shape index: {}]   ;;  %s3165_s3 = inlined_call_operand.vmem [shape: bf16[3,128,64], index: 3, kind: input, shape index: {}]   ;;  %s3166_s4 = inlined_call_operand.hbm [shape: bf16[3,64,32], index: 4, kind: input, shape index: {}]   ;;  %s3167_s5 = inlined_call_operand.vmem [shape: f32[4,256], index: 5, kind: input, shape index: {}]   ;;  %s3168_s6 = inlined_call_operand.vmem [shape: f32[1,8,32], index: 6, kind: output, shape index: {}]  }
   0x1   :  { %s25_s22 = sshll.u32 %s2521_s21, 4  ;;  %s2497_s25 = scalar_lea.hbm %s3166_s4, 1536  ;;  %s26_s22 = int_to_ptr.vmem [resolvable:$true] %s25_s22 }
   0x2   :  { %p2498_p0 = scmp.ne.s32.totalorder %s3166_s4, %s2497_s25  ;;  %p2501_p1 = scmp.lt.u32.totalorder %s2497_s25, %s3166_s4 }
   0x4   :  { %p2503_p2 = pnand %p2501_p1, %p2498_p0 }
   0x6   :  { %2506 = shalt.err (!%p2503_p2)
}
   0x7   :  { %s2507_s30 = scalar_lea.vmem %s26_s22, 1536  ;;  %p2512_p4 = scmp.lt.s32.totalorder %s26_s22, %s26_s22 }
   0x8   :  { %p2508_p3 = scmp.ne.s32.totalorder %s26_s22, %s2507_s30  ;;  %p2513_p5 = scmp.lt.s32.totalorder %s2507_s30, %s2507_s30 }
   0xa   :  { %p2514_p6 = por %p2513_p5, %p2512_p4 }
   0xc   :  { %p2515_p7 = pnand %p2514_p6, %p2508_p3 }
   0xe   :  { %2518 = shalt.err (!%p2515_p7)
}
   0xf   :  { %s2522_s7 = smov 64   ;;  %s2523_s8 = smov 4  }
  0x10   :  { %31 = dma.hbm_to_vmem [thread:$0]  %s3166_s4, 1536, %s26_s22, [#allocation3], %s2522_s7, %s2522_s7, %s2523_s8  }
  0x11   :  { %2519 = dma.done.wait [#allocation3], 1536  }
  0x12   :  { %2520 = vsyncadd [#allocation3], 4294965760  ;;  %v2524_v0 = vmov 0   ;;  %v2331_v1 = vld [vmem:[%s3163_s1 + $0x44] ss:$8 sps:$4 sm:$0xff]   ;;  %vm155_vm0 = vcmask 523264  }
  0x13   :  { %200 = vmatprep.mubr.bf16.mxu0 %v2524_v0  ;;  %v2333_v2 = vld [vmem:[%s3163_s1 + $0x40] ss:$8 sps:$4 sm:$0xff]   ;;  %168 = vmatprep.subr.bf16.mxu0 %v2331_v1  ;;  %v2334_v3 = vld [vmem:[%s3163_s1 + $0x54] ss:$8 sps:$4 sm:$0xff]   ;;  %v2336_v4 = vld [vmem:[%s3163_s1 + $0x50] ss:$8 sps:$4 sm:$0xff]  }
  0x14   :  { %169 = vmatpush1.bf16.msra.mxu0 %v2333_v2  ;;  %v2337_v5 = vld [vmem:[%s3163_s1 + $0x64] ss:$8 sps:$4 sm:$0xff]   ;;  %v2339_v6 = vld [vmem:[%s3163_s1 + $0x60] ss:$8 sps:$4 sm:$0xff]   ;;  %v2340_v9 = vld [vmem:[%s3163_s1 + $0x74] ss:$8 sps:$4 sm:$0xff]  }
  0x15   :  { %170 = vmatprep.subr.bf16.mxu0 %v2334_v3  ;;  %v39_v7 = vld [vmem:[%s3162_s0] sm:$0x3]  ;;  %v41_v8 = vld [vmem:[%s3162_s0 + $0x4] sm:$0x3]  ;;  %v2342_v12 = vld [vmem:[%s3163_s1 + $0x70] ss:$8 sps:$4 sm:$0xff]  }
  0x16   :  { %v55_v10 = vunpack.c.l.u8.bf16 %v39_v7  ;;  %v57_v11 = vunpack.c.l.u8.bf16 %v41_v8  ;;  %v2345_v13 = vld [vmem:[%s3163_s1 + $0x4] ss:$8 sps:$4 sm:$0xff]   ;;  %v2343_v15 = vld [vmem:[%s3163_s1] ss:$8 sps:$4 sm:$0xff]   ;;  %v2348_v18 = vld [vmem:[%s3163_s1 + $0x14] ss:$8 sps:$4 sm:$0xff]  }
  0x17   :  { %v43_v16 = vld [vmem:[%s3162_s0 + $0x8] sm:$0x3]  ;;  %v45_v17 = vld [vmem:[%s3162_s0 + $0xc] sm:$0x3]  ;;  %v2346_v21 = vld [vmem:[%s3163_s1 + $0x10] ss:$8 sps:$4 sm:$0xff]  }
  0x18   :  { %171 = vmatpush1.bf16.msra.mxu0 %v2336_v4  ;;  %v1886_v14 = vcombine.low %v55_v10, %v57_v11  ;;  %v59_v19 = vunpack.c.l.u8.bf16 %v43_v16  ;;  %v61_v20 = vunpack.c.l.u8.bf16 %v45_v17  ;;  %v2351_v22 = vld [vmem:[%s3163_s1 + $0x24] ss:$8 sps:$4 sm:$0xff]   ;;  %v47_v23 = vld [vmem:[%s3162_s0 + $0x10] sm:$0x3]  ;;  %v49_v24 = vld [vmem:[%s3162_s0 + $0x14] sm:$0x3] }
  0x19   :  { %172 = vmatprep.subr.bf16.mxu0 %v2337_v5  ;;  %v2349_v25 = vld [vmem:[%s3163_s1 + $0x20] ss:$8 sps:$4 sm:$0xff]   ;;  %v2354_v27 = vld [vmem:[%s3163_s1 + $0x34] ss:$8 sps:$4 sm:$0xff]   ;;  %v2352_v28 = vld [vmem:[%s3163_s1 + $0x30] ss:$8 sps:$4 sm:$0xff]   ;;  %v63_v29 = vunpack.c.l.u8.bf16 %v47_v23  ;;  %v65_v30 = vunpack.c.l.u8.bf16 %v49_v24  ;;  %v534_v23 = vlaneseq }
  0x1a   :  { %v1887_v26 = vcombine.low %v59_v19, %v61_v20  ;;  %v2357_v31 = vld [vmem:[%s3163_s1 + $0x84] ss:$8 sps:$4 sm:$0xff]   ;;  %v51_v32 = vld [vmem:[%s3162_s0 + $0x18] sm:$0x3]  ;;  %v53_v33 = vld [vmem:[%s3162_s0 + $0x1c] sm:$0x3] }
  0x1b   :  { %v1888_v34 = vcombine.low %v63_v29, %v65_v30  ;;  %v67_v35 = vunpack.c.l.u8.bf16 %v51_v32  ;;  %v69_v36 = vunpack.c.l.u8.bf16 %v53_v33  ;;  %v40_v37 = vld [vmem:[%s3162_s0 + $0x2] sm:$0x3]  ;;  %v42_v41 = vld [vmem:[%s3162_s0 + $0x6] sm:$0x3]  ;;  %v44_v42 = vld [vmem:[%s3162_s0 + $0xa] sm:$0x3] }
  0x1c   :  { %173 = vmatpush1.bf16.msra.mxu0 %v2339_v6  ;;  %v56_v39 = vunpack.c.l.u8.bf16 %v40_v37  ;;  %v2355_v40 = vld [vmem:[%s3163_s1 + $0x80] ss:$8 sps:$4 sm:$0xff]   ;;  %v2360_v44 = vld [vmem:[%s3163_s1 + $0x94] ss:$8 sps:$4 sm:$0xff]   ;;  %v2358_v45 = vld [vmem:[%s3163_s1 + $0x90] ss:$8 sps:$4 sm:$0xff]   ;;  %v58_v46 = vunpack.c.l.u8.bf16 %v42_v41  ;;  %v60_v47 = vunpack.c.l.u8.bf16 %v44_v42 }
  0x1d   :  { %174 = vmatprep.subr.bf16.mxu0 %v2340_v9  ;;  %v1889_v38 = vcombine.low %v67_v35, %v69_v36  ;;  %v2363_v48 = vld [vmem:[%s3163_s1 + $0xa4] ss:$8 sps:$4 sm:$0xff]   ;;  %v48_v50 = vld [vmem:[%s3162_s0 + $0x12] sm:$0x3]  ;;  %v2361_v51 = vld [vmem:[%s3163_s1 + $0xa0] ss:$8 sps:$4 sm:$0xff]  }
  0x1e   :  { %v1902_v43 = vcombine.low %v2524_v0, %v56_v39  ;;  %v46_v49 = vld [vmem:[%s3162_s0 + $0xe] sm:$0x3]  ;;  %v1903_v52 = vcombine.low %v58_v46, %v60_v47  ;;  %v2366_v53 = vld [vmem:[%s3163_s1 + $0xb4] ss:$8 sps:$4 sm:$0xff]   ;;  %v2364_v54 = vld [vmem:[%s3163_s1 + $0xb0] ss:$8 sps:$4 sm:$0xff]   ;;  %v64_v56 = vunpack.c.l.u8.bf16 %v48_v50  ;;  %v1918_v63 = vcombine.low %v56_v39, %v58_v46 }
  0x1f   :  { %v62_v55 = vunpack.c.l.u8.bf16 %v46_v49  ;;  %v50_v57 = vld [vmem:[%s3162_s0 + $0x16] sm:$0x3]  ;;  %v52_v58 = vld [vmem:[%s3162_s0 + $0x1a] sm:$0x3]  ;;  %v54_v3 = vld [vmem:[%s3162_s0 + $0x1e] sm:$0x3] }
  0x20   :  { %175 = vmatpush1.bf16.msra.mxu0 %v2342_v12  ;;  %v66_v60 = vunpack.c.l.u8.bf16 %v50_v57  ;;  %v68_v61 = vunpack.c.l.u8.bf16 %v52_v58  ;;  %v70_v4 = vunpack.c.l.u8.bf16 %v54_v3  ;;  %v2367_v6 = vld [vmem:[%s3164_s2 + $0xc0] sm:$0xff]   ;;  %v2369_v8 = vld [vmem:[%s3164_s2 + $0xc8] sm:$0xff]   ;;  %v2371_v10 = vld [vmem:[%s3164_s2 + $0xd0] sm:$0xff]   ;;  %v2770_v24 = vshrl.u32 %v534_v23, 7 }
  0x21   :  { %313 = vmatprep.subr.bf16.mxu0 %v2345_v13  ;;  %v1904_v59 = vcombine.low %v62_v55, %v64_v56  ;;  %v1919_v1 = vcombine.low %v60_v47, %v62_v55  ;;  %v2368_v7 = vld [vmem:[%s3164_s2 + $0x80] sm:$0xff]   ;;  %2071 = vmatprep.subr.bf16.mxu1 %v2367_v6  ;;  %v2370_v9 = vld [vmem:[%s3164_s2 + $0x88] sm:$0xff]   ;;  %v2372_v11 = vld [vmem:[%s3164_s2 + $0x90] sm:$0xff]  }
  0x22   :  { %v1905_v62 = vcombine.low %v66_v60, %v68_v61  ;;  %v1920_v2 = vcombine.low %v64_v56, %v66_v60  ;;  %v1921_v5 = vcombine.low %v68_v61, %v70_v4  ;;  %2072 = vmatpush3.bf16.msra.mxu1 %v2368_v7  ;;  %v2373_v12 = vld [vmem:[%s3164_s2 + $0xd8] sm:$0xff]   ;;  %v2377_v16 = vld [vmem:[%s3164_s2 + $0xe8] sm:$0xff]   ;;  %v2380_v19 = vld [vmem:[%s3164_s2 + $0xb0] sm:$0xff]  }
  0x23   :  { %1898 = vmatmul.mubr.msk.bf16.vlgmr.msra.gmra.mrb[0].mxu0 %vm155_vm0, %v1886_v14  ;;  %2073 = vmatprep.subr.bf16.mxu1 %v2369_v8  ;;  %v2374_v13 = vld [vmem:[%s3164_s2 + $0x98] sm:$0xff]   ;;  %v2375_v14 = vld [vmem:[%s3164_s2 + $0xe0] sm:$0xff]   ;;  %v2378_v17 = vld [vmem:[%s3164_s2 + $0xa8] sm:$0xff]  }
  0x24   :  { %314 = vmatpush1.bf16.msra.mxu0 %v2343_v15  ;;  %210 = vmatprep.mubr.bf16.mxu0 %v2524_v0  ;;  %v2376_v15 = vld [vmem:[%s3164_s2 + $0xa0] sm:$0xff]   ;;  %v2381_v20 = vld [vmem:[%s3164_s2 + $0xf8] sm:$0xff]  }
  0x25   :  { %315 = vmatprep.subr.bf16.mxu0 %v2348_v18  ;;  %v2379_v18 = vld [vmem:[%s3164_s2 + $0xf0] sm:$0xff]  }
  0x26   :  { %2074 = vmatpush3.bf16.msra.mxu1 %v2370_v9 }
  0x27   :  { %2075 = vmatprep.subr.bf16.mxu1 %v2371_v10 }
  0x28   :  { %316 = vmatpush1.bf16.msra.mxu0 %v2346_v21  ;;  %v2382_v21 = vld [vmem:[%s3164_s2 + $0xb8] sm:$0xff]  }
  0x29   :  { %317 = vmatprep.subr.bf16.mxu0 %v2351_v22  ;;  %v2383_v22 = vld [vmem:[%s3164_s2 + $0x40] sm:$0xff]  }
  0x2a   :  { %2076 = vmatpush3.bf16.msra.mxu1 %v2372_v11 }
  0x2b   :  { %1899 = vmatmul.mubr.msk.bf16.gmra.mrb[4].mxu0 %vm155_vm0, %v1887_v26  ;;  %2077 = vmatprep.subr.bf16.mxu1 %v2373_v12  ;;  %v2776_v26 = vld [vmem:[%s3167_s5] sm:$0xff] }
  0x2c   :  { %220 = vmatprep.mubr.bf16.mxu0 %v2524_v0  ;;  %318 = vmatpush1.bf16.msra.mxu0 %v2349_v25  ;;  %v536_v25 = vsub.s32 0, %v2770_v24 }
  0x2d   :  { %319 = vmatprep.subr.bf16.mxu0 %v2354_v27  ;;  %v540_v27 = vsub.s32 4, %v2770_v24 }
  0x2e   :  { %2078 = vmatpush3.bf16.msra.mxu1 %v2374_v13 }
  0x2f   :  { %2079 = vmatprep.subr.bf16.mxu1 %v2375_v14  ;;  %v541_v29 = vrot.slane %v2776_v26, %v540_v27 }
  0x30   :  { %320 = vmatpush1.bf16.msra.mxu0 %v2352_v28  ;;  %v537_v28 = vrot.slane %v2776_v26, %v536_v25 }
  0x31   :  { %444 = vmatprep.subr.bf16.mxu0 %v2357_v31  ;;  %v2783_v31 = vrot.slane %v541_v29, %v536_v25 }
  0x32   :  { %2080 = vmatpush3.bf16.msra.mxu1 %v2376_v15  ;;  %v2781_v30 = vrot.slane %v537_v28, %v536_v25 }
  0x33   :  { %1900 = vmatmul.mubr.msk.bf16.gmra.mrb[8].mxu0 %vm155_vm0, %v1888_v34  ;;  %2081 = vmatprep.subr.bf16.mxu1 %v2377_v16 }
  0x34   :  { %230 = vmatprep.mubr.bf16.mxu0 %v2524_v0 }
  0x36   :  { %2082 = vmatpush3.bf16.msra.mxu1 %v2378_v17 }
  0x37   :  { %2083 = vmatprep.subr.bf16.mxu1 %v2379_v18 }
  0x3a   :  { %2084 = vmatpush3.bf16.msra.mxu1 %v2380_v19 }
  0x3b   :  { %1901 = vmatmul.mubr.msk.bf16.gmra.mrb[12].mxu0 %vm155_vm0, %v1889_v38  ;;  %2085 = vmatprep.subr.bf16.mxu1 %v2381_v20 }
  0x3c   :  { %345 = vmatprep.mubr.bf16.mxu0 %v2524_v0 }
  0x3e   :  { %2086 = vmatpush3.bf16.msra.mxu1 %v2382_v21 }
  0x3f   :  { %2099 = vmatprep.subr.bf16.mxu1 %v2383_v22 }
  0x43   :  { %1914 = vmatmul.mubr.msk.bf16.vlgmr.msra.gmra.mrb[0].mxu0 %vm155_vm0, %v1902_v43 }
  0x44   :  { %445 = vmatpush1.bf16.msra.mxu0 %v2355_v40  ;;  %355 = vmatprep.mubr.bf16.mxu0 %v2524_v0 }
  0x45   :  { %446 = vmatprep.subr.bf16.mxu0 %v2360_v44 }
  0x48   :  { %447 = vmatpush1.bf16.msra.mxu0 %v2358_v45 }
  0x49   :  { %448 = vmatprep.subr.bf16.mxu0 %v2363_v48 }
  0x4b   :  { %1915 = vmatmul.mubr.msk.bf16.gmra.mrb[4].mxu0 %vm155_vm0, %v1903_v52 }
  0x4c   :  { %365 = vmatprep.mubr.bf16.mxu0 %v2524_v0  ;;  %449 = vmatpush1.bf16.msra.mxu0 %v2361_v51 }
  0x4d   :  { %450 = vmatprep.subr.bf16.mxu0 %v2366_v53 }
  0x50   :  { %451 = vmatpush1.bf16.msra.mxu0 %v2364_v54 }
  0x53   :  { %1916 = vmatmul.mubr.msk.bf16.gmra.mrb[8].mxu0 %vm155_vm0, %v1904_v59 }
  0x54   :  { %375 = vmatprep.mubr.bf16.mxu0 %v2524_v0 }
  0x5b   :  { %1917 = vmatmul.mubr.msk.bf16.gmra.mrb[12].mxu0 %vm155_vm0, %v1905_v62 }
  0x5c   :  { %476 = vmatprep.mubr.bf16.mxu0 %v2524_v0 }
  0x63   :  { %1930 = vmatmul.mubr.msk.bf16.vlgmr.msra.gmra.mrb[0].mxu0 %vm155_vm0, %v1918_v63 }
  0x64   :  { %486 = vmatprep.mubr.bf16.mxu0 %v2524_v0 }
  0x6b   :  { %1931 = vmatmul.mubr.msk.bf16.gmra.mrb[4].mxu0 %vm155_vm0, %v1919_v1 }
  0x6c   :  { %496 = vmatprep.mubr.bf16.mxu0 %v2524_v0 }
  0x73   :  { %1932 = vmatmul.mubr.msk.bf16.gmra.mrb[8].mxu0 %vm155_vm0, %v1920_v2 }
  0x74   :  { %506 = vmatprep.mubr.bf16.mxu0 %v2524_v0 }
  0x7b   :  { %1933 = vmatmul.mubr.msk.bf16.gmra.mrb[12].mxu0 %vm155_vm0, %v1921_v5 }
 0x136   :  { %v478_v32 = vpop.f32.mrb[0].mxu0 }
 0x137   :  { %v2786_v33 = vadd.f32 %v2781_v30, %v478_v32  ;;  %v480_v34 = vpop.f32.mrb[1].mxu0 }
 0x138   :  { %v2789_v35 = vadd.f32 %v2783_v31, %v480_v34  ;;  %v482_v36 = vpop.f32.mrb[2].mxu0 }
 0x139   :  { %v584_v37 = vmin.f32 %v2786_v33, 0.0  ;;  %v554_v38 = vadd.f32 %v2781_v30, %v482_v36  ;;  %v484_v39 = vpop.f32.mrb[3].mxu0  ;;  %vm568_vm1 = vcmp.gt.f32.partialorder %v2786_v33, 0.0 }
 0x13a   :  { %v585_v40 = vmin.f32 %v2789_v35, 0.0  ;;  %v555_v41 = vadd.f32 %v2783_v31, %v484_v39  ;;  %vm569_vm4 = vcmp.gt.f32.partialorder %v2789_v35, 0.0 }
 0x13b   :  { %v600_v42 = vmul.f32 1.442695, %v584_v37  ;;  %v586_v43 = vmin.f32 %v554_v38, 0.0  ;;  %vm570_vm2 = vcmp.gt.f32.partialorder %v554_v38, 0.0 }
 0x13c   :  { %v602_v44 = vmul.f32 1.442695, %v585_v40  ;;  %v587_v45 = vmin.f32 %v555_v41, 0.0  ;;  %vm571_vm3 = vcmp.gt.f32.partialorder %v555_v41, 0.0 }
 0x13d   :  { %2451 = vpow2.f32 %v600_v42  ;;  %v604_v46 = vmul.f32 1.442695, %v586_v43 }
 0x13e   :  { %2453 = vpow2.f32 %v602_v44  ;;  %v606_v47 = vmul.f32 1.442695, %v587_v45  ;;  %v488_v48 = vpop.f32.mrb[4].mxu0 }
 0x13f   :  { %2455 = vpow2.f32 %v604_v46  ;;  %v2796_v49 = vadd.f32 %v2781_v30, %v488_v48  ;;  %v490_v50 = vpop.f32.mrb[5].mxu0 }
 0x140   :  { %2457 = vpow2.f32 %v606_v47  ;;  %v2799_v51 = vadd.f32 %v2783_v31, %v490_v50  ;;  %v492_v52 = vpop.f32.mrb[6].mxu0 }
 0x141   :  { %v588_v53 = vmin.f32 %v2796_v49, 0.0  ;;  %v2803_v54 = vadd.f32 %v2781_v30, %v492_v52  ;;  %v494_v55 = vpop.f32.mrb[7].mxu0  ;;  %vm572_vm5 = vcmp.gt.f32.partialorder %v2796_v49, 0.0 }
 0x142   :  { %v589_v56 = vmin.f32 %v2799_v51, 0.0  ;;  %v2807_v57 = vadd.f32 %v2783_v31, %v494_v55  ;;  %vm573_vm6 = vcmp.gt.f32.partialorder %v2799_v51, 0.0 }
 0x143   :  { %v608_v58 = vmul.f32 1.442695, %v588_v53  ;;  %v590_v59 = vmin.f32 %v2803_v54, 0.0  ;;  %vm574_vm7 = vcmp.gt.f32.partialorder %v2803_v54, 0.0 }
 0x144   :  { %v610_v60 = vmul.f32 1.442695, %v589_v56  ;;  %v591_v61 = vmin.f32 %v2807_v57, 0.0  ;;  %vm575_vm8 = vcmp.gt.f32.partialorder %v2807_v57, 0.0 }
 0x145   :  { %2459 = vpow2.f32 %v608_v58  ;;  %v612_v62 = vmul.f32 1.442695, %v590_v59 }
 0x146   :  { %2461 = vpow2.f32 %v610_v60  ;;  %v614_v63 = vmul.f32 1.442695, %v591_v61  ;;  %v498_v1 = vpop.f32.mrb[8].mxu0 }
 0x147   :  { %v2452_v2 = vpop.eup %2451  ;;  %2463 = vpow2.f32 %v612_v62  ;;  %v2812_v3 = vadd.f32 %v2781_v30, %v498_v1  ;;  %v500_v4 = vpop.f32.mrb[9].mxu0 }
 0x148   :  { %v2454_v5 = vpop.eup %2453  ;;  %2465 = vpow2.f32 %v614_v63  ;;  %v2815_v6 = vadd.f32 %v2783_v31, %v500_v4  ;;  %v502_v7 = vpop.f32.mrb[10].mxu0  ;;  %v1934_v14 = vadd.f32 -1.0, %v2452_v2  ;;  %v2384_v63 = vld [vmem:[%s3164_s2] sm:$0xff]  }
 0x149   :  { %v2456_v8 = vpop.eup %2455  ;;  %v592_v9 = vmin.f32 %v2812_v3, 0.0  ;;  %v2820_v10 = vadd.f32 %v2781_v30, %v502_v7  ;;  %v504_v11 = vpop.f32.mrb[11].mxu0  ;;  %v1935_v12 = vadd.f32 -1.0, %v2454_v5  ;;  %vm576_vm11 = vcmp.gt.f32.partialorder %v2812_v3, 0.0 }
 0x14a   :  { %v2458_v13 = vpop.eup %2457  ;;  %v1936_v15 = vadd.f32 -1.0, %v2456_v8  ;;  %v593_v16 = vmin.f32 %v2815_v6, 0.0  ;;  %v2824_v17 = vadd.f32 %v2783_v31, %v504_v11  ;;  %v2841_v36 = vsel %vm568_vm1, %v2786_v33, %v1934_v14 }
 0x14b   :  { %v616_v18 = vmul.f32 1.442695, %v592_v9  ;;  %v594_v19 = vmin.f32 %v2820_v10, 0.0  ;;  %v1937_v20 = vadd.f32 -1.0, %v2458_v13  ;;  %v2832_v27 = vsel %vm569_vm4, %v2789_v35, %v1935_v12  ;;  %v2386_v9 = vld [vmem:[%s3164_s2 + $0x8] sm:$0xff]  }
 0x14c   :  { %v2827_v21 = vsel %vm570_vm2, %v554_v38, %v1936_v15  ;;  %v595_v22 = vmin.f32 %v2824_v17, 0.0  ;;  %v618_v23 = vmul.f32 1.442695, %v593_v16  ;;  %vm578_vm9 = vcmp.gt.f32.partialorder %v2820_v10, 0.0  ;;  %v2388_v16 = vld [vmem:[%s3164_s2 + $0x10] sm:$0xff]  }
 0x14d   :  { %v620_v25 = vmul.f32 1.442695, %v594_v19  ;;  %v2834_v28 = vsel %vm571_vm3, %v555_v41, %v1937_v20  ;;  %2467 = vpow2.f32 %v616_v18  ;;  %v664_v39 = vpack.c.bf16 %v2827_v21, %v2841_v36 }
 0x14e   :  { %v622_v29 = vmul.f32 1.442695, %v595_v22  ;;  %v508_v32 = vpop.f32.mrb[12].mxu0  ;;  %v665_v34 = vpack.c.bf16 %v2834_v28, %v2832_v27  ;;  %vm579_vm10 = vcmp.gt.f32.partialorder %v2824_v17, 0.0  ;;  %v2389_v22 = vld [vmem:[%s3164_s2 + $0x58] sm:$0xff]   ;;  %vm577_vm12 = vcmp.gt.f32.partialorder %v2815_v6, 0.0 }
 0x14f   :  { %v2460_v37 = vpop.eup %2459  ;;  %2469 = vpow2.f32 %v620_v25  ;;  %v2844_v38 = vadd.f32 %v2781_v30, %v508_v32  ;;  %v510_v35 = vpop.f32.mrb[13].mxu0  ;;  %v2916_v32 = vunpack.c.l.b16 %v2524_v0  ;;  %vm2526_vm2 = vmmov 0  }
 0x150   :  { %v2462_v40 = vpop.eup %2461  ;;  %2471 = vpow2.f32 %v622_v29  ;;  %v2850_v41 = vadd.f32 %v2783_v31, %v510_v35  ;;  %v512_v42 = vpop.f32.mrb[14].mxu0  ;;  %v1938_v33 = vadd.f32 -1.0, %v2460_v37 }
 0x151   :  { %v2464_v43 = vpop.eup %2463  ;;  %v596_v44 = vmin.f32 %v2844_v38, 0.0  ;;  %v2854_v45 = vadd.f32 %v2781_v30, %v512_v42  ;;  %v514_v46 = vpop.f32.mrb[15].mxu0  ;;  %v1939_v47 = vadd.f32 -1.0, %v2462_v40  ;;  %2473 = vpow2.f32 %v618_v23  ;;  %v2390_v42 = vld [vmem:[%s3164_s2 + $0x18] sm:$0xff]  }
 0x152   :  { %v2466_v48 = vpop.eup %2465  ;;  %v597_v50 = vmin.f32 %v2850_v41, 0.0  ;;  %v2858_v52 = vadd.f32 %v2783_v31, %v514_v46  ;;  %v1940_v53 = vadd.f32 -1.0, %v2464_v43  ;;  %v652_v31 = vsel %vm572_vm5, %v2796_v49, %v1938_v33 }
 0x153   :  { %v1941_v55 = vadd.f32 -1.0, %v2466_v48  ;;  %v624_v56 = vmul.f32 1.442695, %v596_v44  ;;  %v598_v58 = vmin.f32 %v2854_v45, 0.0  ;;  %v653_v60 = vsel %vm573_vm6, %v2799_v51, %v1939_v47  ;;  %v2385_v51 = vld [vmem:[%s3164_s2 + $0x48] sm:$0xff]   ;;  %v2391_v44 = vld [vmem:[%s3164_s2 + $0x60] sm:$0xff]  }
 0x154   :  { %v626_v30 = vmul.f32 1.442695, %v597_v50  ;;  %v599_v59 = vmin.f32 %v2858_v52, 0.0  ;;  %v2058_v62 = vpack.c.bf16 %v653_v60, %v2832_v27  ;;  %v2057_v2 = vpack.c.bf16 %v652_v31, %v2841_v36  ;;  %v2398_v60 = vld [vmem:[%s3164_s2 + $0x38] sm:$0xff]   ;;  %v2400_v31 = vld [vmem:[%s3164_s2 + $0x100] sm:$0xff]   ;;  %v2402_v36 = vld [vmem:[%s3164_s2 + $0x108] sm:$0xff]  }
 0x155   :  { %2475 = vpow2.f32 %v624_v56  ;;  %v628_v61 = vmul.f32 1.442695, %v598_v58  ;;  %v2878_v4 = vsel %vm575_vm8, %v2807_v57, %v1941_v55  ;;  %v2883_v49 = vsel %vm574_vm7, %v2803_v54, %v1940_v53  ;;  %v2387_v54 = vld [vmem:[%s3164_s2 + $0x50] sm:$0xff]  }
 0x156   :  { %2477 = vpow2.f32 %v626_v30  ;;  %v630_v1 = vmul.f32 1.442695, %v599_v59  ;;  %928 = vmatprep.mubr.bf16.mxu1 %v2058_v62  ;;  %v2063_v7 = vpack.c.bf16 %v2883_v49, %v2827_v21  ;;  %v2064_v57 = vpack.c.bf16 %v2878_v4, %v2834_v28  ;;  %v2395_v58 = vld [vmem:[%s3164_s2 + $0x70] sm:$0xff]   ;;  %v2397_v59 = vld [vmem:[%s3164_s2 + $0x78] sm:$0xff]   ;;  %v2399_v62 = vld [vmem:[%s3164_s2 + $0x140] sm:$0xff]  }
 0x157   :  { %2479 = vpow2.f32 %v628_v61  ;;  %v2468_v5 = vpop.eup %2467  ;;  %929 = vmatmul.mubr.bf16.vlgmr.msra.gmra.mrb[0].mxu1 %v2057_v2  ;;  %vm580_vm13 = vcmp.gt.f32.partialorder %v2844_v38, 0.0  ;;  %vm581_vm14 = vcmp.gt.f32.partialorder %v2850_v41, 0.0  ;;  %v779_v40 = vunpack.c.h.b16 %v665_v34  ;;  %v2396_v30 = vld [vmem:[%s3164_s2 + $0x30] sm:$0xff]   ;;  %v2409_v28 = vld [vmem:[%s3164_s2 + $0x168] sm:$0xff]  }
 0x158   :  { %2481 = vpow2.f32 %v630_v1  ;;  %2100 = vmatpush3.bf16.msra.mxu1 %v2384_v63  ;;  %v1942_v20 = vadd.f32 -1.0, %v2468_v5  ;;  %vm582_vm15 = vcmp.gt.f32.partialorder %v2854_v45, 0.0  ;;  %vm583_vm1 = vcmp.gt.f32.partialorder %v2858_v52, 0.0  ;;  %v2401_v1 = vld [vmem:[%s3164_s2 + $0x148] sm:$0xff]   ;;  %v2404_v2 = vld [vmem:[%s3164_s2 + $0x110] sm:$0xff]   ;;  %v2406_v5 = vld [vmem:[%s3164_s2 + $0x118] sm:$0xff]  }
 0x159   :  { %v2470_v8 = vpop.eup %2469  ;;  %2101 = vmatprep.subr.bf16.mxu1 %v2385_v51  ;;  %v778_v61 = vunpack.c.h.b16 %v664_v39  ;;  %v2403_v39 = vld [vmem:[%s3164_s2 + $0x150] sm:$0xff]   ;;  %v2405_v51 = vld [vmem:[%s3164_s2 + $0x158] sm:$0xff]   ;;  %v2417_v21 = vld [vmem:[%s3165_s3 + $0x8] sm:$0xff]  }
 0x15a   :  { %v2472_v11 = vpop.eup %2471  ;;  %v1944_v12 = vadd.f32 -1.0, %v2470_v8  ;;  %v656_v46 = vsel %vm576_vm11, %v2812_v3, %v1942_v20  ;;  %v2392_v3 = vld [vmem:[%s3164_s2 + $0x20] sm:$0xff]  }
 0x15b   :  { %v1945_v13 = vadd.f32 -1.0, %v2472_v11  ;;  %v2474_v14 = vpop.eup %2473  ;;  %v945_v63 = vpack.c.b16 %v778_v61, %v2916_v32  ;;  %v2407_v8 = vld [vmem:[%s3164_s2 + $0x160] sm:$0xff]   ;;  %v2412_v11 = vld [vmem:[%s3164_s2 + $0x130] sm:$0xff]  }
 0x15c   :  { %v2898_v15 = vsel %vm578_vm9, %v2820_v10, %v1944_v12  ;;  %2102 = vmatpush3.bf16.msra.mxu1 %v2386_v9  ;;  %v1943_v25 = vadd.f32 -1.0, %v2474_v14  ;;  %v2408_v9 = vld [vmem:[%s3164_s2 + $0x120] sm:$0xff]   ;;  %v2413_v12 = vld [vmem:[%s3164_s2 + $0x178] sm:$0xff]   ;;  %v2525_v14 = vmov 0.0  }
 0x15d   :  { %v2904_v18 = vsel %vm579_vm10, %v2824_v17, %v1945_v13  ;;  %v2061_v19 = vpack.c.bf16 %v2898_v15, %v2883_v49  ;;  %2103 = vmatprep.subr.bf16.mxu1 %v2387_v54  ;;  %v2414_v54 = vld [vmem:[%s3164_s2 + $0x138] sm:$0xff]   ;;  %v2415_v13 = vld [vmem:[%s3165_s3] sm:$0xff]   ;;  %2197 = vmatprep.subr.bf16.mxu0 %v2525_v14  ;;  %v2418_v49 = vld [vmem:[%s3165_s3 + $0x48] sm:$0xff]  }
 0x15e   :  { %v2062_v10 = vpack.c.bf16 %v2904_v18, %v2878_v4  ;;  %v657_v47 = vsel %vm577_vm12, %v2815_v6, %v1943_v25  ;;  %v946_v6 = vpack.c.b16 %v779_v40, %v2916_v32  ;;  %v2410_v4 = vld [vmem:[%s3164_s2 + $0x128] sm:$0xff]   ;;  %v2423_v20 = vld [vmem:[%s3165_s3 + $0x20] sm:$0xff]   ;;  %v2427_v25 = vld [vmem:[%s3165_s3 + $0x30] sm:$0xff]   ;;  %2213 = vmatprep.mubr.msk.bf16.mxu0 %vm2526_vm2, %v2525_v14 }
 0x15f   :  { %v2476_v23 = vpop.eup %2475 }
 0x160   :  { %v2478_v29 = vpop.eup %2477  ;;  %v1946_v17 = vadd.f32 -1.0, %v2476_v23  ;;  %2104 = vmatpush3.bf16.msra.mxu1 %v2388_v16  ;;  %v2420_v16 = vld [vmem:[%s3165_s3 + $0x50] sm:$0xff]   ;;  %v2426_v23 = vld [vmem:[%s3165_s3 + $0x68] sm:$0xff]  }
 0x161   :  { %v2480_v37 = vpop.eup %2479  ;;  %v1947_v35 = vadd.f32 -1.0, %v2478_v29  ;;  %2105 = vmatprep.subr.bf16.mxu1 %v2389_v22  ;;  %v2424_v22 = vld [vmem:[%s3165_s3 + $0x60] sm:$0xff]   ;;  %v2428_v29 = vld [vmem:[%s3165_s3 + $0x70] sm:$0xff]  }
 0x162   :  { %v2482_v43 = vpop.eup %2481  ;;  %v1948_v33 = vadd.f32 -1.0, %v2480_v37  ;;  %v660_v27 = vsel %vm580_vm13, %v2844_v38, %v1946_v17  ;;  %v2429_v17 = vld [vmem:[%s3165_s3 + $0x38] sm:$0xff]  }
 0x163   :  { %v1949_v34 = vadd.f32 -1.0, %v2482_v43  ;;  %v661_v48 = vsel %vm581_vm14, %v2850_v41, %v1947_v35  ;;  %v2059_v50 = vpack.c.bf16 %v660_v27, %v656_v46  ;;  %v2393_v41 = vld [vmem:[%s3164_s2 + $0x68] sm:$0xff]   ;;  %v2430_v37 = vld [vmem:[%s3165_s3 + $0x78] sm:$0xff]  }
 0x164   :  { %v2060_v53 = vpack.c.bf16 %v661_v48, %v657_v47  ;;  %v2940_v55 = vsel %vm582_vm15, %v2854_v45, %v1948_v33  ;;  %2106 = vmatpush3.bf16.msra.mxu1 %v2390_v42 }
 0x165   :  { %v663_v38 = vsel %vm583_vm1, %v2858_v52, %v1949_v34  ;;  %v2065_v56 = vpack.c.bf16 %v2940_v55, %v2898_v15  ;;  %2107 = vmatprep.subr.bf16.mxu1 %v2391_v44  ;;  %v2394_v52 = vld [vmem:[%s3164_s2 + $0x28] sm:$0xff]   ;;  %v2416_v15 = vld [vmem:[%s3165_s3 + $0x40] sm:$0xff]  }
 0x166   :  { %936 = vmatprep.mubr.bf16.mxu1 %v2060_v53  ;;  %v2066_v45 = vpack.c.bf16 %v663_v38, %v2904_v18  ;;  %2198 = vmatpush3.bf16.msra.mxu0 %v2416_v15  ;;  %v2421_v18 = vld [vmem:[%s3165_s3 + $0x18] sm:$0xff]  }
 0x167   :  { %937 = vmatmul.mubr.bf16.gmra.mrb[4].mxu1 %v2059_v50  ;;  %2199 = vmatprep.subr.bf16.mxu0 %v2525_v14 }
 0x168   :  { %1081 = vmatprep.mubr.bf16.mxu1 %v946_v6  ;;  %2108 = vmatpush3.bf16.msra.mxu1 %v2392_v3 }
 0x169   :  { %2109 = vmatprep.subr.bf16.mxu1 %v2393_v41 }
 0x16a   :  { %2200 = vmatpush3.bf16.msra.mxu0 %v2418_v49 }
 0x16b   :  { %2201 = vmatprep.subr.bf16.mxu0 %v2525_v14 }
 0x16c   :  { %2110 = vmatpush3.bf16.msra.mxu1 %v2394_v52 }
 0x16d   :  { %2111 = vmatprep.subr.bf16.mxu1 %v2395_v58 }
 0x16e   :  { %2202 = vmatpush3.bf16.msra.mxu0 %v2420_v16 }
 0x16f   :  { %2203 = vmatprep.subr.bf16.mxu0 %v2525_v14 }
 0x170   :  { %2112 = vmatpush3.bf16.msra.mxu1 %v2396_v30 }
 0x171   :  { %2113 = vmatprep.subr.bf16.mxu1 %v2397_v59 }
 0x174   :  { %2114 = vmatpush3.bf16.msra.mxu1 %v2398_v60 }
 0x175   :  { %2127 = vmatprep.subr.bf16.mxu1 %v2399_v62 }
 0x177   :  { %1082 = vmatmul.mubr.bf16.vlgmr.msra.gmra.mrb[8].mxu1 %v945_v63  ;;  %v1257_v63 = vsub.s32 1, %v2770_v24 }
 0x178   :  { %1089 = vmatprep.mubr.bf16.mxu1 %v2062_v10  ;;  %2128 = vmatpush3.bf16.msra.mxu1 %v2400_v31  ;;  %v2425_v10 = vld [vmem:[%s3165_s3 + $0x28] sm:$0xff]  }
 0x179   :  { %2129 = vmatprep.subr.bf16.mxu1 %v2401_v1 }
 0x17c   :  { %2130 = vmatpush3.bf16.msra.mxu1 %v2402_v36 }
 0x17d   :  { %2131 = vmatprep.subr.bf16.mxu1 %v2403_v39 }
 0x17f   :  { %1090 = vmatmul.mubr.bf16.gmra.mrb[12].mxu1 %v2061_v19  ;;  %v2422_v19 = vld [vmem:[%s3165_s3 + $0x58] sm:$0xff]  }
 0x180   :  { %2132 = vmatpush3.bf16.msra.mxu1 %v2404_v2  ;;  %1234 = vmatprep.mubr.bf16.mxu1 %v2064_v57  ;;  %v2411_v57 = vld [vmem:[%s3164_s2 + $0x170] sm:$0xff]   ;;  %v1258_v2 = vrot.slane %v2776_v26, %v1257_v63 }
 0x181   :  { %2133 = vmatprep.subr.bf16.mxu1 %v2405_v51  ;;  %2204 = vmatpush3.bf16.msra.mxu0 %v2422_v19  ;;  %v2444_v63 = vld [vmem:[#allocation2 + $0x10] sm:$0xff]  }
 0x182   :  { %2205 = vmatprep.subr.bf16.mxu0 %v2525_v14 }
 0x184   :  { %2134 = vmatpush3.bf16.msra.mxu1 %v2406_v5 }
 0x185   :  { %2135 = vmatprep.subr.bf16.mxu1 %v2407_v8  ;;  %2206 = vmatpush3.bf16.msra.mxu0 %v2424_v22 }
 0x186   :  { %2207 = vmatprep.subr.bf16.mxu0 %v2525_v14 }
 0x188   :  { %2136 = vmatpush3.bf16.msra.mxu1 %v2408_v9 }
 0x189   :  { %2137 = vmatprep.subr.bf16.mxu1 %v2409_v28  ;;  %2208 = vmatpush3.bf16.msra.mxu0 %v2426_v23 }
 0x18a   :  { %2209 = vmatprep.subr.bf16.mxu0 %v2525_v14 }
 0x18c   :  { %2138 = vmatpush3.bf16.msra.mxu1 %v2410_v4 }
 0x18d   :  { %2139 = vmatprep.subr.bf16.mxu1 %v2411_v57  ;;  %2210 = vmatpush3.bf16.msra.mxu0 %v2428_v29 }
 0x18e   :  { %2211 = vmatprep.subr.bf16.mxu0 %v2525_v14 }
 0x190   :  { %2140 = vmatpush3.bf16.msra.mxu1 %v2412_v11 }
 0x191   :  { %2141 = vmatprep.subr.bf16.mxu1 %v2413_v12  ;;  %2212 = vmatpush3.bf16.msra.mxu0 %v2430_v37 }
 0x192   :  { %2237 = vmatprep.subr.bf16.mxu0 %v2525_v14 }
 0x194   :  { %2142 = vmatpush3.bf16.msra.mxu1 %v2414_v54 }
 0x195   :  { %2217 = vmatprep.subr.bf16.mxu1 %v2525_v14 }
 0x197   :  { %1235 = vmatmul.mubr.bf16.vlgmr.msra.gmra.mrb[16].mxu1 %v2063_v7  ;;  %v2419_v7 = vld [vmem:[%s3165_s3 + $0x10] sm:$0xff]  }
 0x198   :  { %1242 = vmatprep.mubr.bf16.mxu1 %v2066_v45  ;;  %2218 = vmatpush3.bf16.msra.mxu1 %v2415_v13 }
 0x199   :  { %2219 = vmatprep.subr.bf16.mxu1 %v2525_v14 }
 0x19c   :  { %2220 = vmatpush3.bf16.msra.mxu1 %v2417_v21 }
 0x19d   :  { %2221 = vmatprep.subr.bf16.mxu1 %v2525_v14 }
 0x19f   :  { %1243 = vmatmul.mubr.bf16.gmra.mrb[20].mxu1 %v2065_v56 }
 0x1a0   :  { %2222 = vmatpush3.bf16.msra.mxu1 %v2419_v7  ;;  %2233 = vmatprep.mubr.msk.bf16.mxu1 %vm2526_vm2, %v2525_v14 }
 0x1a1   :  { %2223 = vmatprep.subr.bf16.mxu1 %v2525_v14 }
 0x1a4   :  { %2224 = vmatpush3.bf16.msra.mxu1 %v2421_v18 }
 0x1a5   :  { %2225 = vmatprep.subr.bf16.mxu1 %v2525_v14 }
 0x1a8   :  { %2226 = vmatpush3.bf16.msra.mxu1 %v2423_v20 }
 0x1a9   :  { %2227 = vmatprep.subr.bf16.mxu1 %v2525_v14 }
 0x1ac   :  { %2228 = vmatpush3.bf16.msra.mxu1 %v2425_v10 }
 0x1ad   :  { %2229 = vmatprep.subr.bf16.mxu1 %v2525_v14 }
 0x1b0   :  { %2230 = vmatpush3.bf16.msra.mxu1 %v2427_v25 }
 0x1b1   :  { %2231 = vmatprep.subr.bf16.mxu1 %v2525_v14 }
 0x1b4   :  { %2232 = vmatpush3.bf16.msra.mxu1 %v2429_v17 }
 0x1b5   :  { %2257 = vmatprep.subr.bf16.mxu1 %v2525_v14 }
 0x22a   :  { %v2087_v35 = vpop.f32.mrb[0].mxu1 }
 0x22b   :  { %v2088_v40 = vpop.f32.mrb[1].mxu1 }
 0x22c   :  { %v2089_v42 = vadd.f32 %v2088_v40, %v2087_v35  ;;  %v2090_v43 = vpop.f32.mrb[2].mxu1 }
 0x22d   :  { %v2091_v33 = vpop.f32.mrb[3].mxu1 }
 0x22e   :  { %v2092_v44 = vadd.f32 %v2091_v33, %v2090_v43 }
 0x23a   :  { %v2093_v46 = vpop.f32.mrb[4].mxu1 }
 0x23b   :  { %v2094_v27 = vpop.f32.mrb[5].mxu1 }
 0x23c   :  { %v2095_v34 = vadd.f32 %v2094_v27, %v2093_v46  ;;  %v2096_v47 = vpop.f32.mrb[6].mxu1 }
 0x23d   :  { %v2097_v48 = vpop.f32.mrb[7].mxu1 }
 0x23e   :  { %v2098_v50 = vadd.f32 %v2097_v48, %v2096_v47 }
 0x24a   :  { %v2115_v53 = vpop.f32.mrb[8].mxu1 }
 0x24b   :  { %v2116_v55 = vpop.f32.mrb[9].mxu1 }
 0x24c   :  { %v2117_v3 = vadd.f32 %v2116_v55, %v2115_v53  ;;  %v2118_v38 = vpop.f32.mrb[10].mxu1  ;;  %v2431_v55 = vld [vmem:[%s3165_s3 + $0x80] sm:$0xff]  }
 0x24d   :  { %v2119_v56 = vpop.f32.mrb[11].mxu1 }
 0x24e   :  { %v1084_v6 = vadd.f32 %v2117_v3, %v2089_v42  ;;  %v2120_v41 = vadd.f32 %v2119_v56, %v2118_v38 }
 0x250   :  { %v1087_v45 = vadd.f32 %v2120_v41, %v2092_v44  ;;  %v2434_v41 = vld [vmem:[%s3165_s3 + $0x98] sm:$0xff]  }
 0x252   :  { %v2121_v52 = vpop.f32.mrb[12].mxu1 }
 0x253   :  { %v2122_v58 = vpop.f32.mrb[13].mxu1 }
 0x254   :  { %v2123_v30 = vadd.f32 %v2122_v58, %v2121_v52  ;;  %v2124_v59 = vpop.f32.mrb[14].mxu1  ;;  %v2436_v52 = vld [vmem:[%s3165_s3 + $0xa8] sm:$0xff]   ;;  %v2437_v58 = vld [vmem:[%s3165_s3 + $0xb0] sm:$0xff]  }
 0x255   :  { %v2125_v60 = vpop.f32.mrb[15].mxu1 }
 0x256   :  { %v1092_v61 = vadd.f32 %v2123_v30, %v2095_v34  ;;  %v2126_v62 = vadd.f32 %v2125_v60, %v2124_v59  ;;  %v2438_v30 = vld [vmem:[%s3165_s3 + $0xb8] sm:$0xff]   ;;  %v2439_v59 = vld [vmem:[#allocation2 + $0x20] sm:$0xff]  }
 0x257   :  { %v2440_v60 = vld [vmem:[#allocation2] sm:$0xff]  }
 0x258   :  { %v1095_v31 = vadd.f32 %v2126_v62, %v2098_v50  ;;  %v2442_v62 = vld [vmem:[#allocation2 + $0x8] sm:$0xff]  }
 0x26a   :  { %v2143_v1 = vpop.f32.mrb[16].mxu1 }
 0x26b   :  { %v2144_v36 = vpop.f32.mrb[17].mxu1 }
 0x26c   :  { %v2145_v39 = vadd.f32 %v2144_v36, %v2143_v1  ;;  %v2146_v51 = vpop.f32.mrb[18].mxu1  ;;  %v2445_v1 = vld [vmem:[#allocation2 + $0x38] sm:$0xff]  }
 0x26d   :  { %v2147_v5 = vpop.f32.mrb[19].mxu1  ;;  %v2446_v36 = vld [vmem:[#allocation2 + $0x18] sm:$0xff]  }
 0x26e   :  { %v1251_v8 = vadd.f32 %v2145_v39, %v1084_v6  ;;  %v2148_v9 = vadd.f32 %v2147_v5, %v2146_v51  ;;  %v2433_v6 = vld [vmem:[%s3165_s3 + $0x90] sm:$0xff]  }
 0x270   :  { %v1259_v28 = vadd.f32 %v1258_v2, %v1251_v8  ;;  %v1252_v4 = vadd.f32 %v2148_v9, %v1087_v45  ;;  %v2435_v45 = vld [vmem:[%s3165_s3 + $0xa0] sm:$0xff]  }
 0x272   :  { %v1267_v57 = vmin.f32 %v1259_v28, 0.0  ;;  %v1260_v11 = vadd.f32 %v1258_v2, %v1252_v4  ;;  %v2149_v12 = vpop.f32.mrb[20].mxu1  ;;  %vm1263_vm3 = vcmp.gt.f32.partialorder %v1259_v28, 0.0 }
 0x273   :  { %v2150_v54 = vpop.f32.mrb[21].mxu1 }
 0x274   :  { %v1271_v13 = vmul.f32 1.442695, %v1267_v57  ;;  %v1268_v15 = vmin.f32 %v1260_v11, 0.0  ;;  %v2151_v21 = vadd.f32 %v2150_v54, %v2149_v12  ;;  %v2152_v49 = vpop.f32.mrb[22].mxu1  ;;  %vm1264_vm4 = vcmp.gt.f32.partialorder %v1260_v11, 0.0 }
 0x275   :  { %v2153_v7 = vpop.f32.mrb[23].mxu1  ;;  %v1620_v12 = vsub.s32 2, %v2770_v24 }
 0x276   :  { %2483 = vpow2.f32 %v1271_v13  ;;  %v1273_v16 = vmul.f32 1.442695, %v1268_v15  ;;  %v1253_v18 = vadd.f32 %v2151_v21, %v1092_v61  ;;  %v2154_v19 = vadd.f32 %v2153_v7, %v2152_v49  ;;  %v2441_v61 = vld [vmem:[#allocation2 + $0x28] sm:$0xff]  }
 0x277   :  { %v1621_v54 = vrot.slane %v2776_v26, %v1620_v12 }
 0x278   :  { %2485 = vpow2.f32 %v1273_v16  ;;  %v1261_v20 = vadd.f32 %v1258_v2, %v1253_v18  ;;  %v1254_v22 = vadd.f32 %v2154_v19, %v1095_v31  ;;  %v2443_v31 = vld [vmem:[#allocation2 + $0x30] sm:$0xff]  }
 0x27a   :  { %v1269_v10 = vmin.f32 %v1261_v20, 0.0  ;;  %v1262_v23 = vadd.f32 %v1258_v2, %v1254_v22  ;;  %vm1265_vm5 = vcmp.gt.f32.partialorder %v1261_v20, 0.0 }
 0x27c   :  { %v1275_v25 = vmul.f32 1.442695, %v1269_v10  ;;  %v1270_v29 = vmin.f32 %v1262_v23, 0.0  ;;  %vm1266_vm6 = vcmp.gt.f32.partialorder %v1262_v23, 0.0 }
 0x27e   :  { %2487 = vpow2.f32 %v1275_v25  ;;  %v1277_v17 = vmul.f32 1.442695, %v1270_v29 }
 0x280   :  { %v2484_v37 = vpop.eup %2483  ;;  %2489 = vpow2.f32 %v1277_v17  ;;  %v2447_v17 = vld [vmem:[#allocation2 + $0x40] sm:$0xff]  }
 0x281   :  { %v2008_v35 = vadd.f32 -1.0, %v2484_v37 }
 0x282   :  { %v2486_v40 = vpop.eup %2485 }
 0x283   :  { %v2009_v42 = vadd.f32 -1.0, %v2486_v40  ;;  %v1283_v43 = vsel %vm1263_vm3, %v1259_v28, %v2008_v35  ;;  %v2448_v35 = vld [vmem:[#allocation2 + $0x48] sm:$0xff]  }
 0x285   :  { %v1284_v33 = vsel %vm1264_vm4, %v1260_v11, %v2009_v42  ;;  %v2449_v42 = vld [vmem:[#allocation2 + $0x50] sm:$0xff]  }
 0x286   :  { %v1287_v44 = vpack.c.bf16 %v1284_v33, %v1283_v43 }
 0x288   :  { %v2488_v46 = vpop.eup %2487  ;;  %v1290_v27 = vunpack.c.h.b16 %v1287_v44 }
 0x289   :  { %v2010_v34 = vadd.f32 -1.0, %v2488_v46 }
 0x28a   :  { %v2490_v47 = vpop.eup %2489  ;;  %v1434_v48 = vpack.c.b16 %v1290_v27, %v2916_v32  ;;  %v2432_v32 = vld [vmem:[%s3165_s3 + $0x88] sm:$0xff]  }
 0x28b   :  { %v1285_v50 = vsel %vm1265_vm5, %v1261_v20, %v2010_v34  ;;  %v2011_v53 = vadd.f32 -1.0, %v2490_v47 }
 0x28c   :  { %v2067_v3 = vpack.c.bf16 %v1285_v50, %v1283_v43  ;;  %2234 = vmatmul.mubr.bf16.vlgmr.msra.gmra.mrb[24].mxu1 %v1434_v48 }
 0x28d   :  { %v1286_v38 = vsel %vm1266_vm6, %v1262_v23, %v2011_v53  ;;  %2265 = vmatprep.mubr.msk.bf16.mxu1 %vm2526_vm2, %v2525_v14  ;;  %2258 = vmatpush3.bf16.msra.mxu1 %v2439_v59 }
 0x28e   :  { %2214 = vmatmul.mubr.bf16.vlgmr.msra.gmra.mrb[16].mxu0 %v2067_v3  ;;  %v2068_v56 = vpack.c.bf16 %v1286_v38, %v1284_v33  ;;  %2259 = vmatprep.subr.bf16.mxu1 %v2525_v14  ;;  %v2450_v33 = vld [vmem:[#allocation2 + $0x58] sm:$0xff]  }
 0x28f   :  { %2238 = vmatpush3.bf16.msra.mxu0 %v2431_v55  ;;  %2253 = vmatprep.mubr.msk.bf16.mxu0 %vm2526_vm2, %v2525_v14 }
 0x290   :  { %2239 = vmatprep.subr.bf16.mxu0 %v2525_v14 }
 0x291   :  { %2260 = vmatpush3.bf16.msra.mxu1 %v2441_v61 }
 0x292   :  { %2261 = vmatprep.subr.bf16.mxu1 %v2525_v14 }
 0x293   :  { %2240 = vmatpush3.bf16.msra.mxu0 %v2432_v32 }
 0x294   :  { %2241 = vmatprep.subr.bf16.mxu0 %v2525_v14 }
 0x295   :  { %2262 = vmatpush3.bf16.msra.mxu1 %v2443_v31 }
 0x296   :  { %2263 = vmatprep.subr.bf16.mxu1 %v2525_v14 }
 0x297   :  { %2242 = vmatpush3.bf16.msra.mxu0 %v2433_v6 }
 0x298   :  { %2243 = vmatprep.subr.bf16.mxu0 %v2525_v14 }
 0x299   :  { %2264 = vmatpush3.bf16.msra.mxu1 %v2445_v1 }
 0x29a   :  { %2281 = vmatprep.subr.bf16.mxu1 %v2525_v14 }
 0x29b   :  { %2244 = vmatpush3.bf16.msra.mxu0 %v2434_v41 }
 0x29c   :  { %2245 = vmatprep.subr.bf16.mxu0 %v2525_v14 }
 0x29f   :  { %2246 = vmatpush3.bf16.msra.mxu0 %v2435_v45 }
 0x2a0   :  { %2247 = vmatprep.subr.bf16.mxu0 %v2525_v14 }
 0x2a3   :  { %2248 = vmatpush3.bf16.msra.mxu0 %v2436_v52 }
 0x2a4   :  { %2249 = vmatprep.subr.bf16.mxu0 %v2525_v14 }
 0x2a7   :  { %2250 = vmatpush3.bf16.msra.mxu0 %v2437_v58 }
 0x2a8   :  { %2251 = vmatprep.subr.bf16.mxu0 %v2525_v14 }
 0x2ab   :  { %2252 = vmatpush3.bf16.msra.mxu0 %v2438_v30 }
 0x2ac   :  { %2269 = vmatprep.subr.bf16.mxu0 %v2525_v14 }
 0x2ae   :  { %2254 = vmatmul.mubr.bf16.vlgmr.msra.gmra.mrb[20].mxu0 %v2068_v56  ;;  %v1870_v56 = vsub.s32 3, %v2770_v24 }
 0x2af   :  { %2277 = vmatprep.mubr.msk.bf16.mxu0 %vm2526_vm2, %v2525_v14  ;;  %2270 = vmatpush3.bf16.msra.mxu0 %v2440_v60 }
 0x2b0   :  { %2271 = vmatprep.subr.bf16.mxu0 %v2525_v14  ;;  %v1871_v32 = vrot.slane %v2776_v26, %v1870_v56 }
 0x2b3   :  { %2272 = vmatpush3.bf16.msra.mxu0 %v2442_v62 }
 0x2b4   :  { %2273 = vmatprep.subr.bf16.mxu0 %v2525_v14 }
 0x2b7   :  { %2274 = vmatpush3.bf16.msra.mxu0 %v2444_v63 }
 0x2b8   :  { %2275 = vmatprep.subr.bf16.mxu0 %v2525_v14 }
 0x2bb   :  { %2276 = vmatpush3.bf16.msra.mxu0 %v2446_v36 }
 0x2be   :  { %2278 = vmatmul.mubr.bf16.vlgmr.msra.gmra.mrb[24].mxu0 %v2524_v0 }
 0x35f   :  { %v1518_v39 = vpop.f32.mrb[24].mxu1 }
 0x360   :  { %v2235_v2 = vpop.f32.mrb[25].mxu1 }
 0x361   :  { %v1427_v51 = vpop.f32.mrb[16].mxu0  ;;  %v1521_v5 = vpop.f32.mrb[26].mxu1 }
 0x362   :  { %v1519_v8 = vadd.f32 %v1518_v39, %v1427_v51  ;;  %v2215_v9 = vpop.f32.mrb[17].mxu0  ;;  %v2236_v28 = vpop.f32.mrb[27].mxu1 }
 0x363   :  { %v1430_v4 = vpop.f32.mrb[18].mxu0 }
 0x364   :  { %v1522_v57 = vadd.f32 %v1521_v5, %v1430_v4  ;;  %v2216_v11 = vpop.f32.mrb[19].mxu0 }
 0x381   :  { %v1609_v13 = vpop.f32.mrb[20].mxu0 }
 0x382   :  { %v1616_v15 = vadd.f32 %v1609_v13, %v1519_v8  ;;  %v2255_v21 = vpop.f32.mrb[21].mxu0 }
 0x383   :  { %v1612_v49 = vpop.f32.mrb[22].mxu0 }
 0x384   :  { %v1622_v7 = vadd.f32 %v1621_v54, %v1616_v15  ;;  %v1617_v0 = vadd.f32 %v1612_v49, %v1522_v57  ;;  %v2256_v16 = vpop.f32.mrb[23].mxu0 }
 0x386   :  { %v1626_v18 = vmin.f32 %v1622_v7, 0.0  ;;  %v1623_v20 = vadd.f32 %v1621_v54, %v1617_v0  ;;  %vm1624_vm7 = vcmp.gt.f32.partialorder %v1622_v7, 0.0 }
 0x388   :  { %v1628_v19 = vmul.f32 1.442695, %v1626_v18  ;;  %v1627_v22 = vmin.f32 %v1623_v20, 0.0  ;;  %vm1625_vm8 = vcmp.gt.f32.partialorder %v1623_v20, 0.0 }
 0x38a   :  { %2491 = vpow2.f32 %v1628_v19  ;;  %v1630_v10 = vmul.f32 1.442695, %v1627_v22 }
 0x38c   :  { %2493 = vpow2.f32 %v1630_v10 }
 0x391   :  { %v1794_v27 = vpop.f32.mrb[24].mxu0 }
 0x392   :  { %v2279_v34 = vpop.f32.mrb[25].mxu0 }
 0x393   :  { %v1797_v47 = vpop.f32.mrb[26].mxu0 }
 0x394   :  { %v2492_v23 = vpop.eup %2491  ;;  %v2280_v48 = vpop.f32.mrb[27].mxu0 }
 0x395   :  { %v2038_v25 = vadd.f32 -1.0, %v2492_v23 }
 0x396   :  { %v2494_v40 = vpop.eup %2493 }
 0x397   :  { %v1634_v29 = vsel %vm1624_vm7, %v1622_v7, %v2038_v25  ;;  %v2039_v43 = vadd.f32 -1.0, %v2494_v40 }
 0x398   :  { %v2069_v37 = vpack.c.bf16 %v1634_v29, %v1634_v29 }
 0x399   :  { %v1635_v44 = vsel %vm1625_vm8, %v1623_v20, %v2039_v43 }
 0x39a   :  { %2266 = vmatmul.mubr.msk.bf16.vlgmr.msra.gmra.mrb[28].mxu1 %vm155_vm0, %v2069_v37  ;;  %v2070_v46 = vpack.c.bf16 %v1635_v44, %v1635_v44 }
 0x39b   :  { %2282 = vmatpush3.bf16.msra.mxu1 %v2447_v17  ;;  %2289 = vmatprep.mubr.msk.bf16.mxu1 %vm2526_vm2, %v2525_v14 }
 0x39c   :  { %2283 = vmatprep.subr.bf16.mxu1 %v2525_v14 }
 0x39f   :  { %2284 = vmatpush3.bf16.msra.mxu1 %v2448_v35 }
 0x3a0   :  { %2285 = vmatprep.subr.bf16.mxu1 %v2525_v14 }
 0x3a3   :  { %2286 = vmatpush3.bf16.msra.mxu1 %v2449_v42 }
 0x3a4   :  { %2287 = vmatprep.subr.bf16.mxu1 %v2525_v14 }
 0x3a7   :  { %2288 = vmatpush3.bf16.msra.mxu1 %v2450_v33 }
 0x3aa   :  { %2290 = vmatmul.mubr.msk.bf16.vlgmr.msra.gmra.mrb[32].mxu1 %vm155_vm0, %v2070_v46  ;;  %vm1879_vm0 = vcmask 261120  }
 0x46d   :  { %v1727_v50 = vpop.f32.mrb[28].mxu1 }
 0x46e   :  { %v1795_v53 = vadd.f32 %v1794_v27, %v1727_v50  ;;  %v2267_v55 = vpop.f32.mrb[29].mxu1 }
 0x46f   :  { %v1730_v3 = vpop.f32.mrb[30].mxu1 }
 0x470   :  { %v2268_v38 = vpop.f32.mrb[31].mxu1 }
 0x47d   :  { %v1861_v6 = vpop.f32.mrb[32].mxu1 }
 0x47e   :  { %v1867_v14 = vadd.f32 %v1861_v6, %v1795_v53  ;;  %v2291_v41 = vpop.f32.mrb[33].mxu1 }
 0x47f   :  { %v1864_v45 = vpop.f32.mrb[34].mxu1 }
 0x480   :  { %v1872_v52 = vadd.f32 %v1871_v32, %v1867_v14  ;;  %v2292_v58 = vpop.f32.mrb[35].mxu1 }
 0x482   :  { %v1874_v30 = vmin.f32 %v1872_v52, 0.0  ;;  %vm1873_vm9 = vcmp.gt.f32.partialorder %v1872_v52, 0.0 }
 0x484   :  { %v1875_v59 = vmul.f32 1.442695, %v1874_v30 }
 0x486   :  { %2495 = vpow2.f32 %v1875_v59 }
 0x490   :  { %v2496_v60 = vpop.eup %2495 }
 0x491   :  { %v2056_v61 = vadd.f32 -1.0, %v2496_v60 }
 0x493   :  { %v1878_v62 = vsel %vm1873_vm9, %v1872_v52, %v2056_v61 }
 0x494   :  { %1880 = vst.msk [vmem:[%s3168_s6] sm:$0xff] %vm1879_vm0, %v1878_v62 }
 0x495   :  { %1885 = vsyncpa [#allocation3], 1 }

</bundles_post_ra>
